<compile_context>
chip_gen: v5e
topology: v5e:2x2
jax: 0.10.0
libtpu: 0.0.40
codegen_flags: <defaults>
</compile_context>

<pallas_src>
import math
import functools

import jax
import jax.numpy as jnp
from jax.experimental import pallas as pl
from jax.experimental.pallas import tpu as pltpu


# Set to jnp.bfloat16 on v6e/v7x for ~2x MXU throughput (accumulation stays
# f32).  Default f32 preserves the reference module's numerics exactly.
MATMUL_DTYPE = jnp.float32


def _mm(a, b):
    """2D matmul on the MXU with f32 accumulation."""
    return jnp.dot(a.astype(MATMUL_DTYPE), b.astype(MATMUL_DTYPE),
                   preferred_element_type=jnp.float32)


def _sigmoid(x):
    # tanh form -> EUP slot (free relative to VALU); recommended over 1/(1+e^-x)
    return 0.5 * (jnp.tanh(0.5 * x) + 1.0)


# ---------------------------------------------------------------------------
# LSTM recurrence (shared by all LSTM kernels).  gates_x already contains
# x @ W_ih + b for every timestep; only h @ W_hh + gate nonlinearity are inside
# the (statically unrolled) time loop.  Gate order matches PyTorch: i, f, g, o.
# ---------------------------------------------------------------------------
def _lstm_recurrence(gates_x, whh, ht_ref):
    """gates_x: (T, 4H); whh: (H, 4H); ht_ref block: (1, T, H).  Returns h_end (1, H)."""
    T = gates_x.shape[0]
    H = whh.shape[0]
    whh_c = whh.astype(MATMUL_DTYPE)
    h = jnp.zeros((1, H), jnp.float32)
    c = jnp.zeros((1, H), jnp.float32)
    for t in range(T):                                   # static T -> unrolled
        g = gates_x[t:t + 1, :] + jnp.dot(
            h.astype(MATMUL_DTYPE), whh_c, preferred_element_type=jnp.float32)
        i = _sigmoid(g[:, 0:H])
        f = _sigmoid(g[:, H:2 * H])
        cand = jnp.tanh(g[:, 2 * H:3 * H])
        o = _sigmoid(g[:, 3 * H:4 * H])
        c = f * c + i * cand
        h = o * jnp.tanh(c)
        ht_ref[0, t:t + 1, :] = h
    return h


# ---------------------------------------------------------------------------
# Kernels (one grid step per batch element; everything resident in VMEM).
# ---------------------------------------------------------------------------
def lstm_kernel(x_ref, wih_ref, whh_ref, b_ref, ht_ref):
    x = x_ref[0]                                          # (T, D)
    gates_x = _mm(x, wih_ref[...]) + b_ref[...]           # (T, 4H) hoisted proj
    _lstm_recurrence(gates_x, whh_ref[...], ht_ref)


def lstm_latent_kernel(x_ref, wih_ref, whh_ref, b_ref, wml_ref, bml_ref,
                       eps_ref, ht_ref, z_ref):
    """Last encoder LSTM layer fused with the variational latent head."""
    x = x_ref[0]                                          # (T, D)
    gates_x = _mm(x, wih_ref[...]) + b_ref[...]           # (T, 4H)
    h_end = _lstm_recurrence(gates_x, whh_ref[...], ht_ref)   # (1, H)
    L = eps_ref.shape[-1]
    ml = _mm(h_end, wml_ref[...]) + bml_ref[...]          # (1, 2L) = [mu | logvar]
    mu = ml[:, 0:L]
    lv = ml[:, L:2 * L]
    z_ref[0] = mu + jnp.exp(0.5 * lv) * eps_ref[0]        # (1, L)


def decoder_lstm_kernel(attn_ref, lat_ref, wia_ref, wil_ref, whh_ref, b_ref,
                        ht_ref):
    """First decoder layer: split-input gates, no concat / latent broadcast."""
    attn = attn_ref[0]                                    # (T, H_in)
    gates_x = _mm(attn, wia_ref[...]) + b_ref[...]        # (T, 4H')
    gates_lat = _mm(lat_ref[0], wil_ref[...])             # (1, 4H'), once per batch
    gates_x = gates_x + gates_lat                         # broadcast over T
    _lstm_recurrence(gates_x, whh_ref[...], ht_ref)


def make_mha_var_kernel(n_heads):
    def kernel(h_ref, wqkv_ref, bqkv_ref, wo_ref, bo_ref, wlv_ref, blv_ref,
               eps_ref, out_ref):
        h = h_ref[0]                                      # (T, H)
        A = wo_ref.shape[0]
        hd = A // n_heads
        scale = 1.0 / math.sqrt(float(hd))
        qkv = _mm(h, wqkv_ref[...]) + bqkv_ref[...]       # (T, 3A) fused QKV
        # TODO(synk): heads are looped (n_heads small, hd < 128); a fully
        #             batched multi-head dot would need multi-batch-dim
        #             dot_general which is avoided for lowering safety.
        heads = []
        for hi in range(n_heads):
            q = qkv[:, hi * hd:(hi + 1) * hd]
            k = qkv[:, A + hi * hd:A + (hi + 1) * hd]
            v = qkv[:, 2 * A + hi * hd:2 * A + (hi + 1) * hd]
            s = _mm(q, k.T) * scale                       # (T, T)
            s = s - jnp.max(s, axis=-1, keepdims=True)
            p = jnp.exp(s)
            p = p * pl.reciprocal(jnp.sum(p, axis=-1, keepdims=True), approx=True)
            heads.append(_mm(p, v))                       # (T, hd)
        ctx = jnp.concatenate(heads, axis=-1)             # (T, A)
        attn = _mm(ctx, wo_ref[...]) + bo_ref[...]        # (T, H)
        # fused variational attention (identity mu)
        lv = _mm(attn, wlv_ref[...]) + blv_ref[...]       # (T, H)
        out_ref[0] = attn + jnp.exp(0.5 * lv) * eps_ref[0]
    return kernel


# ---------------------------------------------------------------------------
# pallas_call wrappers (grid over batch, "parallel" -> v7x megacore sharding).
# ---------------------------------------------------------------------------
_PAR = pltpu.CompilerParams(dimension_semantics=("parallel",))


def lstm_forward(x, w_ih_t, w_hh_t, b):
    """x: (B, T, D) -> h_t: (B, T, H)."""
    B, T, D = x.shape
    H = w_hh_t.shape[0]
    return pl.pallas_call(
        lstm_kernel,
        out_shape=jax.ShapeDtypeStruct((B, T, H), jnp.float32),
        grid=(B,),
        in_specs=[
            pl.BlockSpec((1, T, D), lambda bi: (bi, 0, 0)),
            pl.BlockSpec((D, 4 * H), lambda bi: (0, 0)),
            pl.BlockSpec((H, 4 * H), lambda bi: (0, 0)),
            pl.BlockSpec((1, 4 * H), lambda bi: (0, 0)),
        ],
        out_specs=pl.BlockSpec((1, T, H), lambda bi: (bi, 0, 0)),
        compiler_params=_PAR,
    )(x, w_ih_t, w_hh_t, b)


def lstm_latent_forward(x, w_ih_t, w_hh_t, b, wml, bml, eps3):
    """Last encoder layer + variational latent.  eps3: (B, 1, L)."""
    B, T, D = x.shape
    H = w_hh_t.shape[0]
    L = eps3.shape[-1]
    return pl.pallas_call(
        lstm_latent_kernel,
        out_shape=(jax.ShapeDtypeStruct((B, T, H), jnp.float32),
                   jax.ShapeDtypeStruct((B, 1, L), jnp.float32)),
        grid=(B,),
        in_specs=[
            pl.BlockSpec((1, T, D), lambda bi: (bi, 0, 0)),
            pl.BlockSpec((D, 4 * H), lambda bi: (0, 0)),
            pl.BlockSpec((H, 4 * H), lambda bi: (0, 0)),
            pl.BlockSpec((1, 4 * H), lambda bi: (0, 0)),
            pl.BlockSpec((H, 2 * L), lambda bi: (0, 0)),
            pl.BlockSpec((1, 2 * L), lambda bi: (0, 0)),
            pl.BlockSpec((1, 1, L), lambda bi: (bi, 0, 0)),
        ],
        out_specs=(pl.BlockSpec((1, T, H), lambda bi: (bi, 0, 0)),
                   pl.BlockSpec((1, 1, L), lambda bi: (bi, 0, 0))),
        compiler_params=_PAR,
    )(x, w_ih_t, w_hh_t, b, wml, bml, eps3)


def mha_var_forward(h_t, mha_p, va_p, eps, n_heads):
    """h_t, eps: (B, T, H) -> reparameterized attention (B, T, H)."""
    B, T, H = h_t.shape
    A = mha_p["wo"].shape[0]
    return pl.pallas_call(
        make_mha_var_kernel(n_heads),
        out_shape=jax.ShapeDtypeStruct((B, T, H), jnp.float32),
        grid=(B,),
        in_specs=[
            pl.BlockSpec((1, T, H), lambda bi: (bi, 0, 0)),
            pl.BlockSpec((H, 3 * A), lambda bi: (0, 0)),
            pl.BlockSpec((1, 3 * A), lambda bi: (0, 0)),
            pl.BlockSpec((A, H), lambda bi: (0, 0)),
            pl.BlockSpec((1, H), lambda bi: (0, 0)),
            pl.BlockSpec((H, H), lambda bi: (0, 0)),
            pl.BlockSpec((1, H), lambda bi: (0, 0)),
            pl.BlockSpec((1, T, H), lambda bi: (bi, 0, 0)),
        ],
        out_specs=pl.BlockSpec((1, T, H), lambda bi: (bi, 0, 0)),
        compiler_params=_PAR,
    )(h_t, mha_p["wqkv"], mha_p["bqkv"], mha_p["wo"], mha_p["bo"],
      va_p["wlv"], va_p["blv"], eps)


def decoder_lstm_forward(attn, latent3, w_ia, w_il, w_hh, b):
    """attn: (B, T, H_in), latent3: (B, 1, L) -> (B, T, H')."""
    B, T, Hin = attn.shape
    L = latent3.shape[-1]
    H = w_hh.shape[0]
    return pl.pallas_call(
        decoder_lstm_kernel,
        out_shape=jax.ShapeDtypeStruct((B, T, H), jnp.float32),
        grid=(B,),
        in_specs=[
            pl.BlockSpec((1, T, Hin), lambda bi: (bi, 0, 0)),
            pl.BlockSpec((1, 1, L), lambda bi: (bi, 0, 0)),
            pl.BlockSpec((Hin, 4 * H), lambda bi: (0, 0)),
            pl.BlockSpec((L, 4 * H), lambda bi: (0, 0)),
            pl.BlockSpec((H, 4 * H), lambda bi: (0, 0)),
            pl.BlockSpec((1, 4 * H), lambda bi: (0, 0)),
        ],
        out_specs=pl.BlockSpec((1, T, H), lambda bi: (bi, 0, 0)),
        compiler_params=_PAR,
    )(attn, latent3, w_ia, w_il, w_hh, b)


# ---------------------------------------------------------------------------
# Parameter initialization (deterministic, synthetic weights; fused layouts).
# ---------------------------------------------------------------------------
def _init_lstm_layer(key, in_dim, hidden):
    k = jax.random.split(key, 4)
    s = 1.0 / math.sqrt(hidden)
    w_ih_t = jax.random.uniform(k[0], (in_dim, 4 * hidden), jnp.float32, -s, s)
    w_hh_t = jax.random.uniform(k[1], (hidden, 4 * hidden), jnp.float32, -s, s)
    b_ih = jax.random.uniform(k[2], (1, 4 * hidden), jnp.float32, -s, s)
    b_hh = jax.random.uniform(k[3], (1, 4 * hidden), jnp.float32, -s, s)
    return {"w_ih_t": w_ih_t, "w_hh_t": w_hh_t, "b": b_ih + b_hh}


def _init_linear(key, in_dim, out_dim):
    k1, k2 = jax.random.split(key)
    s = 1.0 / math.sqrt(in_dim)
    w = jax.random.uniform(k1, (in_dim, out_dim), jnp.float32, -s, s)
    b = jax.random.uniform(k2, (1, out_dim), jnp.float32, -s, s)
    return w, b


def init_smavra_params(key, input_size, hidden_size, latent_size,
                       attention_size, output_size, num_layers):
    keys = jax.random.split(key, 16)
    params = {}
    # encoder LSTM layers
    enc = []
    d = input_size
    for l in range(num_layers):
        enc.append(_init_lstm_layer(keys[l], d, hidden_size))
        d = hidden_size
    params["encoder"] = enc
    # variational latent: fused [mu | logvar] projection (H, 2L)
    wmu, bmu = _init_linear(keys[4], hidden_size, latent_size)
    wlv, blv = _init_linear(keys[5], hidden_size, latent_size)
    params["var_latent"] = {"wml": jnp.concatenate([wmu, wlv], axis=1),
                            "bml": jnp.concatenate([bmu, blv], axis=1)}
    # multi-head attention: fused [Q | K | V] projection (H, 3A)
    wq, bq = _init_linear(keys[6], hidden_size, attention_size)
    wk, bk = _init_linear(keys[7], hidden_size, attention_size)
    wv, bv = _init_linear(keys[8], hidden_size, attention_size)
    wo, bo = _init_linear(keys[9], attention_size, hidden_size)
    params["mha"] = {"wqkv": jnp.concatenate([wq, wk, wv], axis=1),
                     "bqkv": jnp.concatenate([bq, bk, bv], axis=1),
                     "wo": wo, "bo": bo}
    # variational attention (identity mu, linear logvar H->H)
    wlv_a, blv_a = _init_linear(keys[10], hidden_size, hidden_size)
    params["var_attn"] = {"wlv": wlv_a, "blv": blv_a}
    # decoder LSTM layers (input = concat(attention, latent)); layer 0 split
    dec = []
    d = latent_size + hidden_size
    for l in range(num_layers):
        layer = _init_lstm_layer(keys[11 + l], d, output_size)
        if l == 0:
            layer = {"w_ih_attn_t": layer["w_ih_t"][:hidden_size],
                     "w_ih_lat_t": layer["w_ih_t"][hidden_size:],
                     "w_hh_t": layer["w_hh_t"], "b": layer["b"]}
        dec.append(layer)
        d = output_size
    params["decoder"] = dec
    return params


# ---------------------------------------------------------------------------
# SMAVRA forward pass (use_epoch_latent=False, use_variational_attention=True,
# use_proba_output=False, mask=None, eval-mode dropout).
# ---------------------------------------------------------------------------
def smavra_forward(params, x, eps_latent, eps_attn, n_heads):
    """x: (B, T, input_size) batch-first, float32."""
    # ---- encoder LSTM (stacked); last layer fused with variational latent ----
    h = x
    enc = params["encoder"]
    for layer in enc[:-1]:
        h = lstm_forward(h, layer["w_ih_t"], layer["w_hh_t"], layer["b"])
    last = enc[-1]
    eps_l3 = eps_latent[:, None, :]                      # (B, 1, L)
    h_t, latent = lstm_latent_forward(
        h, last["w_ih_t"], last["w_hh_t"], last["b"],
        params["var_latent"]["wml"], params["var_latent"]["bml"], eps_l3)

    # ---- multi-head self-attention + variational attention (fused) ----
    attention = mha_var_forward(h_t, params["mha"], params["var_attn"],
                                eps_attn, n_heads)        # (B, T, H)

    # ---- decoder LSTM (layer 0 takes attention & latent separately) ----
    dec = params["decoder"]
    d = decoder_lstm_forward(attention, latent,
                             dec[0]["w_ih_attn_t"], dec[0]["w_ih_lat_t"],
                             dec[0]["w_hh_t"], dec[0]["b"])
    for layer in dec[1:]:
        d = lstm_forward(d, layer["w_ih_t"], layer["w_hh_t"], layer["b"])

    decoded_mu = d                                        # (B, T, output_size)
    decoded_scale = None                                  # use_proba_output=False
    return decoded_mu, decoded_scale


# ---------------------------------------------------------------------------
# main
# ---------------------------------------------------------------------------
if __name__ == "__main__":
    B, T = 2, 8
    input_size, hidden_size = 4, 32
    latent_size, attention_size = 16, 32
    output_size, num_layers, n_heads = 4, 1, 2

    key = jax.random.PRNGKey(0)
    k_params, k_x, k_eps_l, k_eps_a = jax.random.split(key, 4)

    params = init_smavra_params(k_params, input_size, hidden_size, latent_size,
                                attention_size, output_size, num_layers)
    x = jax.random.normal(k_x, (B, T, input_size), jnp.float32)
    eps_latent = jax.random.normal(k_eps_l, (B, latent_size), jnp.float32)
    eps_attn = jax.random.normal(k_eps_a, (B, T, hidden_size), jnp.float32)

    fwd = jax.jit(functools.partial(smavra_forward, n_heads=n_heads))
    decoded_mu, decoded_scale = fwd(params, x, eps_latent, eps_attn)
    decoded_mu = jax.block_until_ready(decoded_mu)

    assert decoded_mu.shape == (B, T, output_size)
    assert decoded_scale is None
    print("KERNEL_OK")
</pallas_src>

<mosaic_0001>
module attributes {stable_mosaic.version = 11 : i64} {
  func.func @lstm_latent_kernel(%arg0: i32, %arg1: memref<1x8x4xf32, #tpu.memory_space<vmem>>, %arg2: memref<4x128xf32, #tpu.memory_space<vmem>>, %arg3: memref<32x128xf32, #tpu.memory_space<vmem>>, %arg4: memref<1x128xf32, #tpu.memory_space<vmem>>, %arg5: memref<32x32xf32, #tpu.memory_space<vmem>>, %arg6: memref<1x32xf32, #tpu.memory_space<vmem>>, %arg7: memref<1x1x16xf32, #tpu.memory_space<vmem>>, %arg8: memref<1x8x32xf32, #tpu.memory_space<vmem>>, %arg9: memref<1x1x16xf32, #tpu.memory_space<vmem>>) attributes {dimension_semantics = [#tpu.dimension_semantics<parallel>], iteration_bounds = array<i64: 2>, scalar_prefetch = 0 : i64, scratch_operands = 0 : i64, tpu.core_type = #tpu.core_type<tc>, window_params = [{transform_indices = @transform_0, window_bounds = array<i64: 1, 8, 4>}, {pipeline_mode = #tpu.pipeline_mode<synchronous>, transform_indices = @transform_1, window_bounds = array<i64: 4, 128>}, {pipeline_mode = #tpu.pipeline_mode<synchronous>, transform_indices = @transform_2, window_bounds = array<i64: 32, 128>}, {pipeline_mode = #tpu.pipeline_mode<synchronous>, transform_indices = @transform_3, window_bounds = array<i64: 1, 128>}, {pipeline_mode = #tpu.pipeline_mode<synchronous>, transform_indices = @transform_4, window_bounds = array<i64: 32, 32>}, {pipeline_mode = #tpu.pipeline_mode<synchronous>, transform_indices = @transform_5, window_bounds = array<i64: 1, 32>}, {transform_indices = @transform_6, window_bounds = array<i64: 1, 1, 16>}, {transform_indices = @transform_7, window_bounds = array<i64: 1, 8, 32>}, {transform_indices = @transform_8, window_bounds = array<i64: 1, 1, 16>}]} {
    %c0 = arith.constant 0 : index
    %c0_0 = arith.constant 0 : index
    %c0_1 = arith.constant 0 : index
    %0 = vector.load %arg1[%c0, %c0_0, %c0_1] : memref<1x8x4xf32, #tpu.memory_space<vmem>>, vector<1x8x4xf32>
    %1 = vector.shape_cast %0 : vector<1x8x4xf32> to vector<8x4xf32>
    %c0_2 = arith.constant 0 : index
    %c0_3 = arith.constant 0 : index
    %2 = vector.load %arg2[%c0_2, %c0_3] : memref<4x128xf32, #tpu.memory_space<vmem>>, vector<4x128xf32>
    %cst = arith.constant dense<0.000000e+00> : vector<8x128xf32>
    %3 = tpu.matmul %1, %2, %cst {dimension_numbers = #tpu.dot_dimension_numbers<[1], [0], [0], [1], [0, 0, 1, 1], [], []>} : vector<8x4xf32>, vector<4x128xf32>, vector<8x128xf32> -> vector<8x128xf32>
    %c0_4 = arith.constant 0 : index
    %c0_5 = arith.constant 0 : index
    %4 = vector.load %arg4[%c0_4, %c0_5] : memref<1x128xf32, #tpu.memory_space<vmem>>, vector<1x128xf32>
    %5 = vector.broadcast %4 : vector<1x128xf32> to vector<8x128xf32>
    %6 = arith.addf %3, %5 : vector<8x128xf32>
    %c0_6 = arith.constant 0 : index
    %c0_7 = arith.constant 0 : index
    %7 = vector.load %arg3[%c0_6, %c0_7] : memref<32x128xf32, #tpu.memory_space<vmem>>, vector<32x128xf32>
    %cst_8 = arith.constant 0.000000e+00 : f32
    %8 = vector.broadcast %cst_8 : f32 to vector<1x32xf32>
    %cst_9 = arith.constant 0.000000e+00 : f32
    %9 = vector.broadcast %cst_9 : f32 to vector<1x32xf32>
    %10 = vector.extract_strided_slice %6 {offsets = [0, 0], sizes = [1, 128], strides = [1, 1]} : vector<8x128xf32> to vector<1x128xf32>
    %cst_10 = arith.constant dense<0.000000e+00> : vector<1x128xf32>
    %11 = tpu.matmul %8, %7, %cst_10 {dimension_numbers = #tpu.dot_dimension_numbers<[1], [0], [0], [1], [0, 0, 1, 1], [], []>} : vector<1x32xf32>, vector<32x128xf32>, vector<1x128xf32> -> vector<1x128xf32>
    %12 = arith.addf %10, %11 : vector<1x128xf32>
    %13 = vector.extract_strided_slice %12 {offsets = [0, 0], sizes = [1, 32], strides = [1, 1]} : vector<1x128xf32> to vector<1x32xf32>
    %cst_11 = arith.constant 5.000000e-01 : f32
    %14 = vector.broadcast %cst_11 : f32 to vector<1x32xf32>
    %15 = arith.mulf %14, %13 : vector<1x32xf32>
    %16 = math.tanh %15 : vector<1x32xf32>
    %cst_12 = arith.constant 1.000000e+00 : f32
    %17 = vector.broadcast %cst_12 : f32 to vector<1x32xf32>
    %18 = arith.addf %16, %17 : vector<1x32xf32>
    %cst_13 = arith.constant 5.000000e-01 : f32
    %19 = vector.broadcast %cst_13 : f32 to vector<1x32xf32>
    %20 = arith.mulf %19, %18 : vector<1x32xf32>
    %21 = vector.extract_strided_slice %12 {offsets = [0, 32], sizes = [1, 32], strides = [1, 1]} : vector<1x128xf32> to vector<1x32xf32>
    %cst_14 = arith.constant 5.000000e-01 : f32
    %22 = vector.broadcast %cst_14 : f32 to vector<1x32xf32>
    %23 = arith.mulf %22, %21 : vector<1x32xf32>
    %24 = math.tanh %23 : vector<1x32xf32>
    %cst_15 = arith.constant 1.000000e+00 : f32
    %25 = vector.broadcast %cst_15 : f32 to vector<1x32xf32>
    %26 = arith.addf %24, %25 : vector<1x32xf32>
    %cst_16 = arith.constant 5.000000e-01 : f32
    %27 = vector.broadcast %cst_16 : f32 to vector<1x32xf32>
    %28 = arith.mulf %27, %26 : vector<1x32xf32>
    %29 = vector.extract_strided_slice %12 {offsets = [0, 64], sizes = [1, 32], strides = [1, 1]} : vector<1x128xf32> to vector<1x32xf32>
    %30 = math.tanh %29 : vector<1x32xf32>
    %31 = vector.extract_strided_slice %12 {offsets = [0, 96], sizes = [1, 32], strides = [1, 1]} : vector<1x128xf32> to vector<1x32xf32>
    %cst_17 = arith.constant 5.000000e-01 : f32
    %32 = vector.broadcast %cst_17 : f32 to vector<1x32xf32>
    %33 = arith.mulf %32, %31 : vector<1x32xf32>
    %34 = math.tanh %33 : vector<1x32xf32>
    %cst_18 = arith.constant 1.000000e+00 : f32
    %35 = vector.broadcast %cst_18 : f32 to vector<1x32xf32>
    %36 = arith.addf %34, %35 : vector<1x32xf32>
    %cst_19 = arith.constant 5.000000e-01 : f32
    %37 = vector.broadcast %cst_19 : f32 to vector<1x32xf32>
    %38 = arith.mulf %37, %36 : vector<1x32xf32>
    %39 = arith.mulf %28, %9 : vector<1x32xf32>
    %40 = arith.mulf %20, %30 : vector<1x32xf32>
    %41 = arith.addf %39, %40 : vector<1x32xf32>
    %42 = math.tanh %41 : vector<1x32xf32>
    %43 = arith.mulf %38, %42 : vector<1x32xf32>
    %c0_20 = arith.constant 0 : index
    %c0_21 = arith.constant 0 : index
    %c0_22 = arith.constant 0 : index
    %44 = vector.load %arg8[%c0_20, %c0_21, %c0_22] : memref<1x8x32xf32, #tpu.memory_space<vmem>>, vector<1x1x32xf32>
    %45 = vector.shape_cast %44 : vector<1x1x32xf32> to vector<1x32xf32>
    %46 = vector.shape_cast %43 : vector<1x32xf32> to vector<1x1x32xf32>
    tpu.vector_store %arg8[%c0_20, %c0_21, %c0_22], %46 {strides = array<i32>} : memref<1x8x32xf32, #tpu.memory_space<vmem>>, vector<1x1x32xf32>,
    %47 = vector.extract_strided_slice %6 {offsets = [1, 0], sizes = [1, 128], strides = [1, 1]} : vector<8x128xf32> to vector<1x128xf32>
    %cst_23 = arith.constant dense<0.000000e+00> : vector<1x128xf32>
    %48 = tpu.matmul %43, %7, %cst_23 {dimension_numbers = #tpu.dot_dimension_numbers<[1], [0], [0], [1], [0, 0, 1, 1], [], []>} : vector<1x32xf32>, vector<32x128xf32>, vector<1x128xf32> -> vector<1x128xf32>
    %49 = arith.addf %47, %48 : vector<1x128xf32>
    %50 = vector.extract_strided_slice %49 {offsets = [0, 0], sizes = [1, 32], strides = [1, 1]} : vector<1x128xf32> to vector<1x32xf32>
    %cst_24 = arith.constant 5.000000e-01 : f32
    %51 = vector.broadcast %cst_24 : f32 to vector<1x32xf32>
    %52 = arith.mulf %51, %50 : vector<1x32xf32>
    %53 = math.tanh %52 : vector<1x32xf32>
    %cst_25 = arith.constant 1.000000e+00 : f32
    %54 = vector.broadcast %cst_25 : f32 to vector<1x32xf32>
    %55 = arith.addf %53, %54 : vector<1x32xf32>
    %cst_26 = arith.constant 5.000000e-01 : f32
    %56 = vector.broadcast %cst_26 : f32 to vector<1x32xf32>
    %57 = arith.mulf %56, %55 : vector<1x32xf32>
    %58 = vector.extract_strided_slice %49 {offsets = [0, 32], sizes = [1, 32], strides = [1, 1]} : vector<1x128xf32> to vector<1x32xf32>
    %cst_27 = arith.constant 5.000000e-01 : f32
    %59 = vector.broadcast %cst_27 : f32 to vector<1x32xf32>
    %60 = arith.mulf %59, %58 : vector<1x32xf32>
    %61 = math.tanh %60 : vector<1x32xf32>
    %cst_28 = arith.constant 1.000000e+00 : f32
    %62 = vector.broadcast %cst_28 : f32 to vector<1x32xf32>
    %63 = arith.addf %61, %62 : vector<1x32xf32>
    %cst_29 = arith.constant 5.000000e-01 : f32
    %64 = vector.broadcast %cst_29 : f32 to vector<1x32xf32>
    %65 = arith.mulf %64, %63 : vector<1x32xf32>
    %66 = vector.extract_strided_slice %49 {offsets = [0, 64], sizes = [1, 32], strides = [1, 1]} : vector<1x128xf32> to vector<1x32xf32>
    %67 = math.tanh %66 : vector<1x32xf32>
    %68 = vector.extract_strided_slice %49 {offsets = [0, 96], sizes = [1, 32], strides = [1, 1]} : vector<1x128xf32> to vector<1x32xf32>
    %cst_30 = arith.constant 5.000000e-01 : f32
    %69 = vector.broadcast %cst_30 : f32 to vector<1x32xf32>
    %70 = arith.mulf %69, %68 : vector<1x32xf32>
    %71 = math.tanh %70 : vector<1x32xf32>
    %cst_31 = arith.constant 1.000000e+00 : f32
    %72 = vector.broadcast %cst_31 : f32 to vector<1x32xf32>
    %73 = arith.addf %71, %72 : vector<1x32xf32>
    %cst_32 = arith.constant 5.000000e-01 : f32
    %74 = vector.broadcast %cst_32 : f32 to vector<1x32xf32>
    %75 = arith.mulf %74, %73 : vector<1x32xf32>
    %76 = arith.mulf %65, %41 : vector<1x32xf32>
    %77 = arith.mulf %57, %67 : vector<1x32xf32>
    %78 = arith.addf %76, %77 : vector<1x32xf32>
    %79 = math.tanh %78 : vector<1x32xf32>
    %80 = arith.mulf %75, %79 : vector<1x32xf32>
    %c0_33 = arith.constant 0 : index
    %c1 = arith.constant 1 : index
    %c0_34 = arith.constant 0 : index
    %81 = vector.load %arg8[%c0_33, %c1, %c0_34] : memref<1x8x32xf32, #tpu.memory_space<vmem>>, vector<1x1x32xf32>
    %82 = vector.shape_cast %81 : vector<1x1x32xf32> to vector<1x32xf32>
    %83 = vector.shape_cast %80 : vector<1x32xf32> to vector<1x1x32xf32>
    tpu.vector_store %arg8[%c0_33, %c1, %c0_34], %83 {strides = array<i32>} : memref<1x8x32xf32, #tpu.memory_space<vmem>>, vector<1x1x32xf32>,
    %84 = vector.extract_strided_slice %6 {offsets = [2, 0], sizes = [1, 128], strides = [1, 1]} : vector<8x128xf32> to vector<1x128xf32>
    %cst_35 = arith.constant dense<0.000000e+00> : vector<1x128xf32>
    %85 = tpu.matmul %80, %7, %cst_35 {dimension_numbers = #tpu.dot_dimension_numbers<[1], [0], [0], [1], [0, 0, 1, 1], [], []>} : vector<1x32xf32>, vector<32x128xf32>, vector<1x128xf32> -> vector<1x128xf32>
    %86 = arith.addf %84, %85 : vector<1x128xf32>
    %87 = vector.extract_strided_slice %86 {offsets = [0, 0], sizes = [1, 32], strides = [1, 1]} : vector<1x128xf32> to vector<1x32xf32>
    %cst_36 = arith.constant 5.000000e-01 : f32
    %88 = vector.broadcast %cst_36 : f32 to vector<1x32xf32>
    %89 = arith.mulf %88, %87 : vector<1x32xf32>
    %90 = math.tanh %89 : vector<1x32xf32>
    %cst_37 = arith.constant 1.000000e+00 : f32
    %91 = vector.broadcast %cst_37 : f32 to vector<1x32xf32>
    %92 = arith.addf %90, %91 : vector<1x32xf32>
    %cst_38 = arith.constant 5.000000e-01 : f32
    %93 = vector.broadcast %cst_38 : f32 to vector<1x32xf32>
    %94 = arith.mulf %93, %92 : vector<1x32xf32>
    %95 = vector.extract_strided_slice %86 {offsets = [0, 32], sizes = [1, 32], strides = [1, 1]} : vector<1x128xf32> to vector<1x32xf32>
    %cst_39 = arith.constant 5.000000e-01 : f32
    %96 = vector.broadcast %cst_39 : f32 to vector<1x32xf32>
    %97 = arith.mulf %96, %95 : vector<1x32xf32>
    %98 = math.tanh %97 : vector<1x32xf32>
    %cst_40 = arith.constant 1.000000e+00 : f32
    %99 = vector.broadcast %cst_40 : f32 to vector<1x32xf32>
    %100 = arith.addf %98, %99 : vector<1x32xf32>
    %cst_41 = arith.constant 5.000000e-01 : f32
    %101 = vector.broadcast %cst_41 : f32 to vector<1x32xf32>
    %102 = arith.mulf %101, %100 : vector<1x32xf32>
    %103 = vector.extract_strided_slice %86 {offsets = [0, 64], sizes = [1, 32], strides = [1, 1]} : vector<1x128xf32> to vector<1x32xf32>
    %104 = math.tanh %103 : vector<1x32xf32>
    %105 = vector.extract_strided_slice %86 {offsets = [0, 96], sizes = [1, 32], strides = [1, 1]} : vector<1x128xf32> to vector<1x32xf32>
    %cst_42 = arith.constant 5.000000e-01 : f32
    %106 = vector.broadcast %cst_42 : f32 to vector<1x32xf32>
    %107 = arith.mulf %106, %105 : vector<1x32xf32>
    %108 = math.tanh %107 : vector<1x32xf32>
    %cst_43 = arith.constant 1.000000e+00 : f32
    %109 = vector.broadcast %cst_43 : f32 to vector<1x32xf32>
    %110 = arith.addf %108, %109 : vector<1x32xf32>
    %cst_44 = arith.constant 5.000000e-01 : f32
    %111 = vector.broadcast %cst_44 : f32 to vector<1x32xf32>
    %112 = arith.mulf %111, %110 : vector<1x32xf32>
    %113 = arith.mulf %102, %78 : vector<1x32xf32>
    %114 = arith.mulf %94, %104 : vector<1x32xf32>
    %115 = arith.addf %113, %114 : vector<1x32xf32>
    %116 = math.tanh %115 : vector<1x32xf32>
    %117 = arith.mulf %112, %116 : vector<1x32xf32>
    %c0_45 = arith.constant 0 : index
    %c2 = arith.constant 2 : index
    %c0_46 = arith.constant 0 : index
    %118 = vector.load %arg8[%c0_45, %c2, %c0_46] : memref<1x8x32xf32, #tpu.memory_space<vmem>>, vector<1x1x32xf32>
    %119 = vector.shape_cast %118 : vector<1x1x32xf32> to vector<1x32xf32>
    %120 = vector.shape_cast %117 : vector<1x32xf32> to vector<1x1x32xf32>
    tpu.vector_store %arg8[%c0_45, %c2, %c0_46], %120 {strides = array<i32>} : memref<1x8x32xf32, #tpu.memory_space<vmem>>, vector<1x1x32xf32>,
    %121 = vector.extract_strided_slice %6 {offsets = [3, 0], sizes = [1, 128], strides = [1, 1]} : vector<8x128xf32> to vector<1x128xf32>
    %cst_47 = arith.constant dense<0.000000e+00> : vector<1x128xf32>
    %122 = tpu.matmul %117, %7, %cst_47 {dimension_numbers = #tpu.dot_dimension_numbers<[1], [0], [0], [1], [0, 0, 1, 1], [], []>} : vector<1x32xf32>, vector<32x128xf32>, vector<1x128xf32> -> vector<1x128xf32>
    %123 = arith.addf %121, %122 : vector<1x128xf32>
    %124 = vector.extract_strided_slice %123 {offsets = [0, 0], sizes = [1, 32], strides = [1, 1]} : vector<1x128xf32> to vector<1x32xf32>
    %cst_48 = arith.constant 5.000000e-01 : f32
    %125 = vector.broadcast %cst_48 : f32 to vector<1x32xf32>
    %126 = arith.mulf %125, %124 : vector<1x32xf32>
    %127 = math.tanh %126 : vector<1x32xf32>
    %cst_49 = arith.constant 1.000000e+00 : f32
    %128 = vector.broadcast %cst_49 : f32 to vector<1x32xf32>
    %129 = arith.addf %127, %128 : vector<1x32xf32>
    %cst_50 = arith.constant 5.000000e-01 : f32
    %130 = vector.broadcast %cst_50 : f32 to vector<1x32xf32>
    %131 = arith.mulf %130, %129 : vector<1x32xf32>
    %132 = vector.extract_strided_slice %123 {offsets = [0, 32], sizes = [1, 32], strides = [1, 1]} : vector<1x128xf32> to vector<1x32xf32>
    %cst_51 = arith.constant 5.000000e-01 : f32
    %133 = vector.broadcast %cst_51 : f32 to vector<1x32xf32>
    %134 = arith.mulf %133, %132 : vector<1x32xf32>
    %135 = math.tanh %134 : vector<1x32xf32>
    %cst_52 = arith.constant 1.000000e+00 : f32
    %136 = vector.broadcast %cst_52 : f32 to vector<1x32xf32>
    %137 = arith.addf %135, %136 : vector<1x32xf32>
    %cst_53 = arith.constant 5.000000e-01 : f32
    %138 = vector.broadcast %cst_53 : f32 to vector<1x32xf32>
    %139 = arith.mulf %138, %137 : vector<1x32xf32>
    %140 = vector.extract_strided_slice %123 {offsets = [0, 64], sizes = [1, 32], strides = [1, 1]} : vector<1x128xf32> to vector<1x32xf32>
    %141 = math.tanh %140 : vector<1x32xf32>
    %142 = vector.extract_strided_slice %123 {offsets = [0, 96], sizes = [1, 32], strides = [1, 1]} : vector<1x128xf32> to vector<1x32xf32>
    %cst_54 = arith.constant 5.000000e-01 : f32
    %143 = vector.broadcast %cst_54 : f32 to vector<1x32xf32>
    %144 = arith.mulf %143, %142 : vector<1x32xf32>
    %145 = math.tanh %144 : vector<1x32xf32>
    %cst_55 = arith.constant 1.000000e+00 : f32
    %146 = vector.broadcast %cst_55 : f32 to vector<1x32xf32>
    %147 = arith.addf %145, %146 : vector<1x32xf32>
    %cst_56 = arith.constant 5.000000e-01 : f32
    %148 = vector.broadcast %cst_56 : f32 to vector<1x32xf32>
    %149 = arith.mulf %148, %147 : vector<1x32xf32>
    %150 = arith.mulf %139, %115 : vector<1x32xf32>
    %151 = arith.mulf %131, %141 : vector<1x32xf32>
    %152 = arith.addf %150, %151 : vector<1x32xf32>
    %153 = math.tanh %152 : vector<1x32xf32>
    %154 = arith.mulf %149, %153 : vector<1x32xf32>
    %c0_57 = arith.constant 0 : index
    %c3 = arith.constant 3 : index
    %c0_58 = arith.constant 0 : index
    %155 = vector.load %arg8[%c0_57, %c3, %c0_58] : memref<1x8x32xf32, #tpu.memory_space<vmem>>, vector<1x1x32xf32>
    %156 = vector.shape_cast %155 : vector<1x1x32xf32> to vector<1x32xf32>
    %157 = vector.shape_cast %154 : vector<1x32xf32> to vector<1x1x32xf32>
    tpu.vector_store %arg8[%c0_57, %c3, %c0_58], %157 {strides = array<i32>} : memref<1x8x32xf32, #tpu.memory_space<vmem>>, vector<1x1x32xf32>,
    %158 = vector.extract_strided_slice %6 {offsets = [4, 0], sizes = [1, 128], strides = [1, 1]} : vector<8x128xf32> to vector<1x128xf32>
    %cst_59 = arith.constant dense<0.000000e+00> : vector<1x128xf32>
    %159 = tpu.matmul %154, %7, %cst_59 {dimension_numbers = #tpu.dot_dimension_numbers<[1], [0], [0], [1], [0, 0, 1, 1], [], []>} : vector<1x32xf32>, vector<32x128xf32>, vector<1x128xf32> -> vector<1x128xf32>
    %160 = arith.addf %158, %159 : vector<1x128xf32>
    %161 = vector.extract_strided_slice %160 {offsets = [0, 0], sizes = [1, 32], strides = [1, 1]} : vector<1x128xf32> to vector<1x32xf32>
    %cst_60 = arith.constant 5.000000e-01 : f32
    %162 = vector.broadcast %cst_60 : f32 to vector<1x32xf32>
    %163 = arith.mulf %162, %161 : vector<1x32xf32>
    %164 = math.tanh %163 : vector<1x32xf32>
    %cst_61 = arith.constant 1.000000e+00 : f32
    %165 = vector.broadcast %cst_61 : f32 to vector<1x32xf32>
    %166 = arith.addf %164, %165 : vector<1x32xf32>
    %cst_62 = arith.constant 5.000000e-01 : f32
    %167 = vector.broadcast %cst_62 : f32 to vector<1x32xf32>
    %168 = arith.mulf %167, %166 : vector<1x32xf32>
    %169 = vector.extract_strided_slice %160 {offsets = [0, 32], sizes = [1, 32], strides = [1, 1]} : vector<1x128xf32> to vector<1x32xf32>
    %cst_63 = arith.constant 5.000000e-01 : f32
    %170 = vector.broadcast %cst_63 : f32 to vector<1x32xf32>
    %171 = arith.mulf %170, %169 : vector<1x32xf32>
    %172 = math.tanh %171 : vector<1x32xf32>
    %cst_64 = arith.constant 1.000000e+00 : f32
    %173 = vector.broadcast %cst_64 : f32 to vector<1x32xf32>
    %174 = arith.addf %172, %173 : vector<1x32xf32>
    %cst_65 = arith.constant 5.000000e-01 : f32
    %175 = vector.broadcast %cst_65 : f32 to vector<1x32xf32>
    %176 = arith.mulf %175, %174 : vector<1x32xf32>
    %177 = vector.extract_strided_slice %160 {offsets = [0, 64], sizes = [1, 32], strides = [1, 1]} : vector<1x128xf32> to vector<1x32xf32>
    %178 = math.tanh %177 : vector<1x32xf32>
    %179 = vector.extract_strided_slice %160 {offsets = [0, 96], sizes = [1, 32], strides = [1, 1]} : vector<1x128xf32> to vector<1x32xf32>
    %cst_66 = arith.constant 5.000000e-01 : f32
    %180 = vector.broadcast %cst_66 : f32 to vector<1x32xf32>
    %181 = arith.mulf %180, %179 : vector<1x32xf32>
    %182 = math.tanh %181 : vector<1x32xf32>
    %cst_67 = arith.constant 1.000000e+00 : f32
    %183 = vector.broadcast %cst_67 : f32 to vector<1x32xf32>
    %184 = arith.addf %182, %183 : vector<1x32xf32>
    %cst_68 = arith.constant 5.000000e-01 : f32
    %185 = vector.broadcast %cst_68 : f32 to vector<1x32xf32>
    %186 = arith.mulf %185, %184 : vector<1x32xf32>
    %187 = arith.mulf %176, %152 : vector<1x32xf32>
    %188 = arith.mulf %168, %178 : vector<1x32xf32>
    %189 = arith.addf %187, %188 : vector<1x32xf32>
    %190 = math.tanh %189 : vector<1x32xf32>
    %191 = arith.mulf %186, %190 : vector<1x32xf32>
    %c0_69 = arith.constant 0 : index
    %c4 = arith.constant 4 : index
    %c0_70 = arith.constant 0 : index
    %192 = vector.load %arg8[%c0_69, %c4, %c0_70] : memref<1x8x32xf32, #tpu.memory_space<vmem>>, vector<1x1x32xf32>
    %193 = vector.shape_cast %192 : vector<1x1x32xf32> to vector<1x32xf32>
    %194 = vector.shape_cast %191 : vector<1x32xf32> to vector<1x1x32xf32>
    tpu.vector_store %arg8[%c0_69, %c4, %c0_70], %194 {strides = array<i32>} : memref<1x8x32xf32, #tpu.memory_space<vmem>>, vector<1x1x32xf32>,
    %195 = vector.extract_strided_slice %6 {offsets = [5, 0], sizes = [1, 128], strides = [1, 1]} : vector<8x128xf32> to vector<1x128xf32>
    %cst_71 = arith.constant dense<0.000000e+00> : vector<1x128xf32>
    %196 = tpu.matmul %191, %7, %cst_71 {dimension_numbers = #tpu.dot_dimension_numbers<[1], [0], [0], [1], [0, 0, 1, 1], [], []>} : vector<1x32xf32>, vector<32x128xf32>, vector<1x128xf32> -> vector<1x128xf32>
    %197 = arith.addf %195, %196 : vector<1x128xf32>
    %198 = vector.extract_strided_slice %197 {offsets = [0, 0], sizes = [1, 32], strides = [1, 1]} : vector<1x128xf32> to vector<1x32xf32>
    %cst_72 = arith.constant 5.000000e-01 : f32
    %199 = vector.broadcast %cst_72 : f32 to vector<1x32xf32>
    %200 = arith.mulf %199, %198 : vector<1x32xf32>
    %201 = math.tanh %200 : vector<1x32xf32>
    %cst_73 = arith.constant 1.000000e+00 : f32
    %202 = vector.broadcast %cst_73 : f32 to vector<1x32xf32>
    %203 = arith.addf %201, %202 : vector<1x32xf32>
    %cst_74 = arith.constant 5.000000e-01 : f32
    %204 = vector.broadcast %cst_74 : f32 to vector<1x32xf32>
    %205 = arith.mulf %204, %203 : vector<1x32xf32>
    %206 = vector.extract_strided_slice %197 {offsets = [0, 32], sizes = [1, 32], strides = [1, 1]} : vector<1x128xf32> to vector<1x32xf32>
    %cst_75 = arith.constant 5.000000e-01 : f32
    %207 = vector.broadcast %cst_75 : f32 to vector<1x32xf32>
    %208 = arith.mulf %207, %206 : vector<1x32xf32>
    %209 = math.tanh %208 : vector<1x32xf32>
    %cst_76 = arith.constant 1.000000e+00 : f32
    %210 = vector.broadcast %cst_76 : f32 to vector<1x32xf32>
    %211 = arith.addf %209, %210 : vector<1x32xf32>
    %cst_77 = arith.constant 5.000000e-01 : f32
    %212 = vector.broadcast %cst_77 : f32 to vector<1x32xf32>
    %213 = arith.mulf %212, %211 : vector<1x32xf32>
    %214 = vector.extract_strided_slice %197 {offsets = [0, 64], sizes = [1, 32], strides = [1, 1]} : vector<1x128xf32> to vector<1x32xf32>
    %215 = math.tanh %214 : vector<1x32xf32>
    %216 = vector.extract_strided_slice %197 {offsets = [0, 96], sizes = [1, 32], strides = [1, 1]} : vector<1x128xf32> to vector<1x32xf32>
    %cst_78 = arith.constant 5.000000e-01 : f32
    %217 = vector.broadcast %cst_78 : f32 to vector<1x32xf32>
    %218 = arith.mulf %217, %216 : vector<1x32xf32>
    %219 = math.tanh %218 : vector<1x32xf32>
    %cst_79 = arith.constant 1.000000e+00 : f32
    %220 = vector.broadcast %cst_79 : f32 to vector<1x32xf32>
    %221 = arith.addf %219, %220 : vector<1x32xf32>
    %cst_80 = arith.constant 5.000000e-01 : f32
    %222 = vector.broadcast %cst_80 : f32 to vector<1x32xf32>
    %223 = arith.mulf %222, %221 : vector<1x32xf32>
    %224 = arith.mulf %213, %189 : vector<1x32xf32>
    %225 = arith.mulf %205, %215 : vector<1x32xf32>
    %226 = arith.addf %224, %225 : vector<1x32xf32>
    %227 = math.tanh %226 : vector<1x32xf32>
    %228 = arith.mulf %223, %227 : vector<1x32xf32>
    %c0_81 = arith.constant 0 : index
    %c5 = arith.constant 5 : index
    %c0_82 = arith.constant 0 : index
    %229 = vector.load %arg8[%c0_81, %c5, %c0_82] : memref<1x8x32xf32, #tpu.memory_space<vmem>>, vector<1x1x32xf32>
    %230 = vector.shape_cast %229 : vector<1x1x32xf32> to vector<1x32xf32>
    %231 = vector.shape_cast %228 : vector<1x32xf32> to vector<1x1x32xf32>
    tpu.vector_store %arg8[%c0_81, %c5, %c0_82], %231 {strides = array<i32>} : memref<1x8x32xf32, #tpu.memory_space<vmem>>, vector<1x1x32xf32>,
    %232 = vector.extract_strided_slice %6 {offsets = [6, 0], sizes = [1, 128], strides = [1, 1]} : vector<8x128xf32> to vector<1x128xf32>
    %cst_83 = arith.constant dense<0.000000e+00> : vector<1x128xf32>
    %233 = tpu.matmul %228, %7, %cst_83 {dimension_numbers = #tpu.dot_dimension_numbers<[1], [0], [0], [1], [0, 0, 1, 1], [], []>} : vector<1x32xf32>, vector<32x128xf32>, vector<1x128xf32> -> vector<1x128xf32>
    %234 = arith.addf %232, %233 : vector<1x128xf32>
    %235 = vector.extract_strided_slice %234 {offsets = [0, 0], sizes = [1, 32], strides = [1, 1]} : vector<1x128xf32> to vector<1x32xf32>
    %cst_84 = arith.constant 5.000000e-01 : f32
    %236 = vector.broadcast %cst_84 : f32 to vector<1x32xf32>
    %237 = arith.mulf %236, %235 : vector<1x32xf32>
    %238 = math.tanh %237 : vector<1x32xf32>
    %cst_85 = arith.constant 1.000000e+00 : f32
    %239 = vector.broadcast %cst_85 : f32 to vector<1x32xf32>
    %240 = arith.addf %238, %239 : vector<1x32xf32>
    %cst_86 = arith.constant 5.000000e-01 : f32
    %241 = vector.broadcast %cst_86 : f32 to vector<1x32xf32>
    %242 = arith.mulf %241, %240 : vector<1x32xf32>
    %243 = vector.extract_strided_slice %234 {offsets = [0, 32], sizes = [1, 32], strides = [1, 1]} : vector<1x128xf32> to vector<1x32xf32>
    %cst_87 = arith.constant 5.000000e-01 : f32
    %244 = vector.broadcast %cst_87 : f32 to vector<1x32xf32>
    %245 = arith.mulf %244, %243 : vector<1x32xf32>
    %246 = math.tanh %245 : vector<1x32xf32>
    %cst_88 = arith.constant 1.000000e+00 : f32
    %247 = vector.broadcast %cst_88 : f32 to vector<1x32xf32>
    %248 = arith.addf %246, %247 : vector<1x32xf32>
    %cst_89 = arith.constant 5.000000e-01 : f32
    %249 = vector.broadcast %cst_89 : f32 to vector<1x32xf32>
    %250 = arith.mulf %249, %248 : vector<1x32xf32>
    %251 = vector.extract_strided_slice %234 {offsets = [0, 64], sizes = [1, 32], strides = [1, 1]} : vector<1x128xf32> to vector<1x32xf32>
    %252 = math.tanh %251 : vector<1x32xf32>
    %253 = vector.extract_strided_slice %234 {offsets = [0, 96], sizes = [1, 32], strides = [1, 1]} : vector<1x128xf32> to vector<1x32xf32>
    %cst_90 = arith.constant 5.000000e-01 : f32
    %254 = vector.broadcast %cst_90 : f32 to vector<1x32xf32>
    %255 = arith.mulf %254, %253 : vector<1x32xf32>
    %256 = math.tanh %255 : vector<1x32xf32>
    %cst_91 = arith.constant 1.000000e+00 : f32
    %257 = vector.broadcast %cst_91 : f32 to vector<1x32xf32>
    %258 = arith.addf %256, %257 : vector<1x32xf32>
    %cst_92 = arith.constant 5.000000e-01 : f32
    %259 = vector.broadcast %cst_92 : f32 to vector<1x32xf32>
    %260 = arith.mulf %259, %258 : vector<1x32xf32>
    %261 = arith.mulf %250, %226 : vector<1x32xf32>
    %262 = arith.mulf %242, %252 : vector<1x32xf32>
    %263 = arith.addf %261, %262 : vector<1x32xf32>
    %264 = math.tanh %263 : vector<1x32xf32>
    %265 = arith.mulf %260, %264 : vector<1x32xf32>
    %c0_93 = arith.constant 0 : index
    %c6 = arith.constant 6 : index
    %c0_94 = arith.constant 0 : index
    %266 = vector.load %arg8[%c0_93, %c6, %c0_94] : memref<1x8x32xf32, #tpu.memory_space<vmem>>, vector<1x1x32xf32>
    %267 = vector.shape_cast %266 : vector<1x1x32xf32> to vector<1x32xf32>
    %268 = vector.shape_cast %265 : vector<1x32xf32> to vector<1x1x32xf32>
    tpu.vector_store %arg8[%c0_93, %c6, %c0_94], %268 {strides = array<i32>} : memref<1x8x32xf32, #tpu.memory_space<vmem>>, vector<1x1x32xf32>,
    %269 = vector.extract_strided_slice %6 {offsets = [7, 0], sizes = [1, 128], strides = [1, 1]} : vector<8x128xf32> to vector<1x128xf32>
    %cst_95 = arith.constant dense<0.000000e+00> : vector<1x128xf32>
    %270 = tpu.matmul %265, %7, %cst_95 {dimension_numbers = #tpu.dot_dimension_numbers<[1], [0], [0], [1], [0, 0, 1, 1], [], []>} : vector<1x32xf32>, vector<32x128xf32>, vector<1x128xf32> -> vector<1x128xf32>
    %271 = arith.addf %269, %270 : vector<1x128xf32>
    %272 = vector.extract_strided_slice %271 {offsets = [0, 0], sizes = [1, 32], strides = [1, 1]} : vector<1x128xf32> to vector<1x32xf32>
    %cst_96 = arith.constant 5.000000e-01 : f32
    %273 = vector.broadcast %cst_96 : f32 to vector<1x32xf32>
    %274 = arith.mulf %273, %272 : vector<1x32xf32>
    %275 = math.tanh %274 : vector<1x32xf32>
    %cst_97 = arith.constant 1.000000e+00 : f32
    %276 = vector.broadcast %cst_97 : f32 to vector<1x32xf32>
    %277 = arith.addf %275, %276 : vector<1x32xf32>
    %cst_98 = arith.constant 5.000000e-01 : f32
    %278 = vector.broadcast %cst_98 : f32 to vector<1x32xf32>
    %279 = arith.mulf %278, %277 : vector<1x32xf32>
    %280 = vector.extract_strided_slice %271 {offsets = [0, 32], sizes = [1, 32], strides = [1, 1]} : vector<1x128xf32> to vector<1x32xf32>
    %cst_99 = arith.constant 5.000000e-01 : f32
    %281 = vector.broadcast %cst_99 : f32 to vector<1x32xf32>
    %282 = arith.mulf %281, %280 : vector<1x32xf32>
    %283 = math.tanh %282 : vector<1x32xf32>
    %cst_100 = arith.constant 1.000000e+00 : f32
    %284 = vector.broadcast %cst_100 : f32 to vector<1x32xf32>
    %285 = arith.addf %283, %284 : vector<1x32xf32>
    %cst_101 = arith.constant 5.000000e-01 : f32
    %286 = vector.broadcast %cst_101 : f32 to vector<1x32xf32>
    %287 = arith.mulf %286, %285 : vector<1x32xf32>
    %288 = vector.extract_strided_slice %271 {offsets = [0, 64], sizes = [1, 32], strides = [1, 1]} : vector<1x128xf32> to vector<1x32xf32>
    %289 = math.tanh %288 : vector<1x32xf32>
    %290 = vector.extract_strided_slice %271 {offsets = [0, 96], sizes = [1, 32], strides = [1, 1]} : vector<1x128xf32> to vector<1x32xf32>
    %cst_102 = arith.constant 5.000000e-01 : f32
    %291 = vector.broadcast %cst_102 : f32 to vector<1x32xf32>
    %292 = arith.mulf %291, %290 : vector<1x32xf32>
    %293 = math.tanh %292 : vector<1x32xf32>
    %cst_103 = arith.constant 1.000000e+00 : f32
    %294 = vector.broadcast %cst_103 : f32 to vector<1x32xf32>
    %295 = arith.addf %293, %294 : vector<1x32xf32>
    %cst_104 = arith.constant 5.000000e-01 : f32
    %296 = vector.broadcast %cst_104 : f32 to vector<1x32xf32>
    %297 = arith.mulf %296, %295 : vector<1x32xf32>
    %298 = arith.mulf %287, %263 : vector<1x32xf32>
    %299 = arith.mulf %279, %289 : vector<1x32xf32>
    %300 = arith.addf %298, %299 : vector<1x32xf32>
    %301 = math.tanh %300 : vector<1x32xf32>
    %302 = arith.mulf %297, %301 : vector<1x32xf32>
    %c0_105 = arith.constant 0 : index
    %c7 = arith.constant 7 : index
    %c0_106 = arith.constant 0 : index
    %303 = vector.load %arg8[%c0_105, %c7, %c0_106] : memref<1x8x32xf32, #tpu.memory_space<vmem>>, vector<1x1x32xf32>
    %304 = vector.shape_cast %303 : vector<1x1x32xf32> to vector<1x32xf32>
    %305 = vector.shape_cast %302 : vector<1x32xf32> to vector<1x1x32xf32>
    tpu.vector_store %arg8[%c0_105, %c7, %c0_106], %305 {strides = array<i32>} : memref<1x8x32xf32, #tpu.memory_space<vmem>>, vector<1x1x32xf32>,
    %c0_107 = arith.constant 0 : index
    %c0_108 = arith.constant 0 : index
    %306 = vector.load %arg5[%c0_107, %c0_108] : memref<32x32xf32, #tpu.memory_space<vmem>>, vector<32x32xf32>
    %cst_109 = arith.constant dense<0.000000e+00> : vector<1x32xf32>
    %307 = tpu.matmul %302, %306, %cst_109 {dimension_numbers = #tpu.dot_dimension_numbers<[1], [0], [0], [1], [0, 0, 1, 1], [], []>} : vector<1x32xf32>, vector<32x32xf32>, vector<1x32xf32> -> vector<1x32xf32>
    %c0_110 = arith.constant 0 : index
    %c0_111 = arith.constant 0 : index
    %308 = vector.load %arg6[%c0_110, %c0_111] : memref<1x32xf32, #tpu.memory_space<vmem>>, vector<1x32xf32>
    %309 = arith.addf %307, %308 : vector<1x32xf32>
    %310 = vector.extract_strided_slice %309 {offsets = [0, 0], sizes = [1, 16], strides = [1, 1]} : vector<1x32xf32> to vector<1x16xf32>
    %311 = vector.extract_strided_slice %309 {offsets = [0, 16], sizes = [1, 16], strides = [1, 1]} : vector<1x32xf32> to vector<1x16xf32>
    %cst_112 = arith.constant 5.000000e-01 : f32
    %312 = vector.broadcast %cst_112 : f32 to vector<1x16xf32>
    %313 = arith.mulf %312, %311 : vector<1x16xf32>
    %314 = math.exp %313 : vector<1x16xf32>
    %c0_113 = arith.constant 0 : index
    %c0_114 = arith.constant 0 : index
    %c0_115 = arith.constant 0 : index
    %315 = vector.load %arg7[%c0_113, %c0_114, %c0_115] : memref<1x1x16xf32, #tpu.memory_space<vmem>>, vector<1x1x16xf32>
    %316 = vector.shape_cast %315 : vector<1x1x16xf32> to vector<1x16xf32>
    %317 = arith.mulf %314, %316 : vector<1x16xf32>
    %318 = arith.addf %310, %317 : vector<1x16xf32>
    %c0_116 = arith.constant 0 : index
    %c0_117 = arith.constant 0 : index
    %c0_118 = arith.constant 0 : index
    %319 = vector.load %arg9[%c0_116, %c0_117, %c0_118] : memref<1x1x16xf32, #tpu.memory_space<vmem>>, vector<1x1x16xf32>
    %320 = vector.shape_cast %319 : vector<1x1x16xf32> to vector<1x16xf32>
    %321 = vector.shape_cast %318 : vector<1x16xf32> to vector<1x1x16xf32>
    tpu.vector_store %arg9[%c0_116, %c0_117, %c0_118], %321 {strides = array<i32>} : memref<1x1x16xf32, #tpu.memory_space<vmem>>, vector<1x1x16xf32>,
    return
  }
  func.func @transform_0(%arg0: i32) -> (i32, i32, i32) {
    %c0_i32 = arith.constant 0 : i32
    %c0_i32_0 = arith.constant 0 : i32
    %c0_i32_1 = arith.constant 0 : i32
    return %arg0, %c0_i32, %c0_i32_0 : i32, i32, i32
  }
  func.func @transform_1(%arg0: i32) -> (i32, i32) {
    %c0_i32 = arith.constant 0 : i32
    %c0_i32_0 = arith.constant 0 : i32
    %c0_i32_1 = arith.constant 0 : i32
    return %c0_i32, %c0_i32_0 : i32, i32
  }
  func.func @transform_2(%arg0: i32) -> (i32, i32) {
    %c0_i32 = arith.constant 0 : i32
    %c0_i32_0 = arith.constant 0 : i32
    %c0_i32_1 = arith.constant 0 : i32
    return %c0_i32, %c0_i32_0 : i32, i32
  }
  func.func @transform_3(%arg0: i32) -> (i32, i32) {
    %c0_i32 = arith.constant 0 : i32
    %c0_i32_0 = arith.constant 0 : i32
    %c0_i32_1 = arith.constant 0 : i32
    return %c0_i32, %c0_i32_0 : i32, i32
  }
  func.func @transform_4(%arg0: i32) -> (i32, i32) {
    %c0_i32 = arith.constant 0 : i32
    %c0_i32_0 = arith.constant 0 : i32
    %c0_i32_1 = arith.constant 0 : i32
    return %c0_i32, %c0_i32_0 : i32, i32
  }
  func.func @transform_5(%arg0: i32) -> (i32, i32) {
    %c0_i32 = arith.constant 0 : i32
    %c0_i32_0 = arith.constant 0 : i32
    %c0_i32_1 = arith.constant 0 : i32
    return %c0_i32, %c0_i32_0 : i32, i32
  }
  func.func @transform_6(%arg0: i32) -> (i32, i32, i32) {
    %c0_i32 = arith.constant 0 : i32
    %c0_i32_0 = arith.constant 0 : i32
    %c0_i32_1 = arith.constant 0 : i32
    return %arg0, %c0_i32, %c0_i32_0 : i32, i32, i32
  }
  func.func @transform_7(%arg0: i32) -> (i32, i32, i32) {
    %c0_i32 = arith.constant 0 : i32
    %c0_i32_0 = arith.constant 0 : i32
    %c0_i32_1 = arith.constant 0 : i32
    return %arg0, %c0_i32, %c0_i32_0 : i32, i32, i32
  }
  func.func @transform_8(%arg0: i32) -> (i32, i32, i32) {
    %c0_i32 = arith.constant 0 : i32
    %c0_i32_0 = arith.constant 0 : i32
    %c0_i32_1 = arith.constant 0 : i32
    return %arg0, %c0_i32, %c0_i32_0 : i32, i32, i32
  }
}

module attributes {stable_mosaic.version = 11 : i64} {
  func.func @kernel(%arg0: i32, %arg1: memref<1x8x32xf32, #tpu.memory_space<vmem>>, %arg2: memref<32x96xf32, #tpu.memory_space<vmem>>, %arg3: memref<1x96xf32, #tpu.memory_space<vmem>>, %arg4: memref<32x32xf32, #tpu.memory_space<vmem>>, %arg5: memref<1x32xf32, #tpu.memory_space<vmem>>, %arg6: memref<32x32xf32, #tpu.memory_space<vmem>>, %arg7: memref<1x32xf32, #tpu.memory_space<vmem>>, %arg8: memref<1x8x32xf32, #tpu.memory_space<vmem>>, %arg9: memref<1x8x32xf32, #tpu.memory_space<vmem>>) attributes {dimension_semantics = [#tpu.dimension_semantics<parallel>], iteration_bounds = array<i64: 2>, scalar_prefetch = 0 : i64, scratch_operands = 0 : i64, tpu.core_type = #tpu.core_type<tc>, window_params = [{transform_indices = @transform_0, window_bounds = array<i64: 1, 8, 32>}, {pipeline_mode = #tpu.pipeline_mode<synchronous>, transform_indices = @transform_1, window_bounds = array<i64: 32, 96>}, {pipeline_mode = #tpu.pipeline_mode<synchronous>, transform_indices = @transform_2, window_bounds = array<i64: 1, 96>}, {pipeline_mode = #tpu.pipeline_mode<synchronous>, transform_indices = @transform_3, window_bounds = array<i64: 32, 32>}, {pipeline_mode = #tpu.pipeline_mode<synchronous>, transform_indices = @transform_4, window_bounds = array<i64: 1, 32>}, {pipeline_mode = #tpu.pipeline_mode<synchronous>, transform_indices = @transform_5, window_bounds = array<i64: 32, 32>}, {pipeline_mode = #tpu.pipeline_mode<synchronous>, transform_indices = @transform_6, window_bounds = array<i64: 1, 32>}, {transform_indices = @transform_7, window_bounds = array<i64: 1, 8, 32>}, {transform_indices = @transform_8, window_bounds = array<i64: 1, 8, 32>}]} {
    %c0 = arith.constant 0 : index
    %c0_0 = arith.constant 0 : index
    %c0_1 = arith.constant 0 : index
    %0 = vector.load %arg1[%c0, %c0_0, %c0_1] : memref<1x8x32xf32, #tpu.memory_space<vmem>>, vector<1x8x32xf32>
    %1 = vector.shape_cast %0 : vector<1x8x32xf32> to vector<8x32xf32>
    %c0_2 = arith.constant 0 : index
    %c0_3 = arith.constant 0 : index
    %2 = vector.load %arg2[%c0_2, %c0_3] : memref<32x96xf32, #tpu.memory_space<vmem>>, vector<32x96xf32>
    %cst = arith.constant dense<0.000000e+00> : vector<8x96xf32>
    %3 = tpu.matmul %1, %2, %cst {dimension_numbers = #tpu.dot_dimension_numbers<[1], [0], [0], [1], [0, 0, 1, 1], [], []>} : vector<8x32xf32>, vector<32x96xf32>, vector<8x96xf32> -> vector<8x96xf32>
    %c0_4 = arith.constant 0 : index
    %c0_5 = arith.constant 0 : index
    %4 = vector.load %arg3[%c0_4, %c0_5] : memref<1x96xf32, #tpu.memory_space<vmem>>, vector<1x96xf32>
    %5 = vector.broadcast %4 : vector<1x96xf32> to vector<8x96xf32>
    %6 = arith.addf %3, %5 : vector<8x96xf32>
    %7 = vector.extract_strided_slice %6 {offsets = [0, 0], sizes = [8, 16], strides = [1, 1]} : vector<8x96xf32> to vector<8x16xf32>
    %8 = vector.extract_strided_slice %6 {offsets = [0, 32], sizes = [8, 16], strides = [1, 1]} : vector<8x96xf32> to vector<8x16xf32>
    %9 = vector.extract_strided_slice %6 {offsets = [0, 64], sizes = [8, 16], strides = [1, 1]} : vector<8x96xf32> to vector<8x16xf32>
    %10 = tpu.transpose %8, [1, 0] : vector<8x16xf32> -> vector<16x8xf32>
    %cst_6 = arith.constant dense<0.000000e+00> : vector<8x8xf32>
    %11 = tpu.matmul %7, %10, %cst_6 {dimension_numbers = #tpu.dot_dimension_numbers<[1], [0], [0], [1], [0, 0, 1, 1], [], []>} : vector<8x16xf32>, vector<16x8xf32>, vector<8x8xf32> -> vector<8x8xf32>
    %cst_7 = arith.constant 2.500000e-01 : f32
    %12 = vector.broadcast %cst_7 : f32 to vector<8x8xf32>
    %13 = arith.mulf %11, %12 : vector<8x8xf32>
    %cst_8 = arith.constant dense<0xFF800000> : vector<8xf32>
    %14 = vector.multi_reduction <maximumf>, %13, %cst_8 [1] : vector<8x8xf32> to vector<8xf32>
    %15 = vector.shape_cast %14 : vector<8xf32> to vector<8x1xf32>
    %16 = vector.broadcast %15 : vector<8x1xf32> to vector<8x8xf32>
    %17 = arith.subf %13, %16 : vector<8x8xf32>
    %18 = math.exp %17 : vector<8x8xf32>
    %cst_9 = arith.constant dense<0.000000e+00> : vector<8xf32>
    %19 = vector.multi_reduction <add>, %18, %cst_9 [1] : vector<8x8xf32> to vector<8xf32>
    %20 = vector.shape_cast %19 : vector<8xf32> to vector<8x1xf32>
    %21 = tpu.reciprocal %20 {approx = true} : vector<8x1xf32> -> vector<8x1xf32>
    %22 = vector.broadcast %21 : vector<8x1xf32> to vector<8x8xf32>
    %23 = arith.mulf %18, %22 : vector<8x8xf32>
    %cst_10 = arith.constant dense<0.000000e+00> : vector<8x16xf32>
    %24 = tpu.matmul %23, %9, %cst_10 {dimension_numbers = #tpu.dot_dimension_numbers<[1], [0], [0], [1], [0, 0, 1, 1], [], []>} : vector<8x8xf32>, vector<8x16xf32>, vector<8x16xf32> -> vector<8x16xf32>
    %25 = vector.extract_strided_slice %6 {offsets = [0, 16], sizes = [8, 16], strides = [1, 1]} : vector<8x96xf32> to vector<8x16xf32>
    %26 = vector.extract_strided_slice %6 {offsets = [0, 48], sizes = [8, 16], strides = [1, 1]} : vector<8x96xf32> to vector<8x16xf32>
    %27 = vector.extract_strided_slice %6 {offsets = [0, 80], sizes = [8, 16], strides = [1, 1]} : vector<8x96xf32> to vector<8x16xf32>
    %28 = tpu.transpose %26, [1, 0] : vector<8x16xf32> -> vector<16x8xf32>
    %cst_11 = arith.constant dense<0.000000e+00> : vector<8x8xf32>
    %29 = tpu.matmul %25, %28, %cst_11 {dimension_numbers = #tpu.dot_dimension_numbers<[1], [0], [0], [1], [0, 0, 1, 1], [], []>} : vector<8x16xf32>, vector<16x8xf32>, vector<8x8xf32> -> vector<8x8xf32>
    %cst_12 = arith.constant 2.500000e-01 : f32
    %30 = vector.broadcast %cst_12 : f32 to vector<8x8xf32>
    %31 = arith.mulf %29, %30 : vector<8x8xf32>
    %cst_13 = arith.constant dense<0xFF800000> : vector<8xf32>
    %32 = vector.multi_reduction <maximumf>, %31, %cst_13 [1] : vector<8x8xf32> to vector<8xf32>
    %33 = vector.shape_cast %32 : vector<8xf32> to vector<8x1xf32>
    %34 = vector.broadcast %33 : vector<8x1xf32> to vector<8x8xf32>
    %35 = arith.subf %31, %34 : vector<8x8xf32>
    %36 = math.exp %35 : vector<8x8xf32>
    %cst_14 = arith.constant dense<0.000000e+00> : vector<8xf32>
    %37 = vector.multi_reduction <add>, %36, %cst_14 [1] : vector<8x8xf32> to vector<8xf32>
    %38 = vector.shape_cast %37 : vector<8xf32> to vector<8x1xf32>
    %39 = tpu.reciprocal %38 {approx = true} : vector<8x1xf32> -> vector<8x1xf32>
    %40 = vector.broadcast %39 : vector<8x1xf32> to vector<8x8xf32>
    %41 = arith.mulf %36, %40 : vector<8x8xf32>
    %cst_15 = arith.constant dense<0.000000e+00> : vector<8x16xf32>
    %42 = tpu.matmul %41, %27, %cst_15 {dimension_numbers = #tpu.dot_dimension_numbers<[1], [0], [0], [1], [0, 0, 1, 1], [], []>} : vector<8x8xf32>, vector<8x16xf32>, vector<8x16xf32> -> vector<8x16xf32>
    %43 = tpu.concatenate %24, %42 in 1 : vector<8x16xf32>, vector<8x16xf32> -> vector<8x32xf32>
    %c0_16 = arith.constant 0 : index
    %c0_17 = arith.constant 0 : index
    %44 = vector.load %arg4[%c0_16, %c0_17] : memref<32x32xf32, #tpu.memory_space<vmem>>, vector<32x32xf32>
    %cst_18 = arith.constant dense<0.000000e+00> : vector<8x32xf32>
    %45 = tpu.matmul %43, %44, %cst_18 {dimension_numbers = #tpu.dot_dimension_numbers<[1], [0], [0], [1], [0, 0, 1, 1], [], []>} : vector<8x32xf32>, vector<32x32xf32>, vector<8x32xf32> -> vector<8x32xf32>
    %c0_19 = arith.constant 0 : index
    %c0_20 = arith.constant 0 : index
    %46 = vector.load %arg5[%c0_19, %c0_20] : memref<1x32xf32, #tpu.memory_space<vmem>>, vector<1x32xf32>
    %47 = vector.broadcast %46 : vector<1x32xf32> to vector<8x32xf32>
    %48 = arith.addf %45, %47 : vector<8x32xf32>
    %c0_21 = arith.constant 0 : index
    %c0_22 = arith.constant 0 : index
    %49 = vector.load %arg6[%c0_21, %c0_22] : memref<32x32xf32, #tpu.memory_space<vmem>>, vector<32x32xf32>
    %cst_23 = arith.constant dense<0.000000e+00> : vector<8x32xf32>
    %50 = tpu.matmul %48, %49, %cst_23 {dimension_numbers = #tpu.dot_dimension_numbers<[1], [0], [0], [1], [0, 0, 1, 1], [], []>} : vector<8x32xf32>, vector<32x32xf32>, vector<8x32xf32> -> vector<8x32xf32>
    %c0_24 = arith.constant 0 : index
    %c0_25 = arith.constant 0 : index
    %51 = vector.load %arg7[%c0_24, %c0_25] : memref<1x32xf32, #tpu.memory_space<vmem>>, vector<1x32xf32>
    %52 = vector.broadcast %51 : vector<1x32xf32> to vector<8x32xf32>
    %53 = arith.addf %50, %52 : vector<8x32xf32>
    %cst_26 = arith.constant 5.000000e-01 : f32
    %54 = vector.broadcast %cst_26 : f32 to vector<8x32xf32>
    %55 = arith.mulf %54, %53 : vector<8x32xf32>
    %56 = math.exp %55 : vector<8x32xf32>
    %c0_27 = arith.constant 0 : index
    %c0_28 = arith.constant 0 : index
    %c0_29 = arith.constant 0 : index
    %57 = vector.load %arg8[%c0_27, %c0_28, %c0_29] : memref<1x8x32xf32, #tpu.memory_space<vmem>>, vector<1x8x32xf32>
    %58 = vector.shape_cast %57 : vector<1x8x32xf32> to vector<8x32xf32>
    %59 = arith.mulf %56, %58 : vector<8x32xf32>
    %60 = arith.addf %48, %59 : vector<8x32xf32>
    %c0_30 = arith.constant 0 : index
    %c0_31 = arith.constant 0 : index
    %c0_32 = arith.constant 0 : index
    %61 = vector.load %arg9[%c0_30, %c0_31, %c0_32] : memref<1x8x32xf32, #tpu.memory_space<vmem>>, vector<1x8x32xf32>
    %62 = vector.shape_cast %61 : vector<1x8x32xf32> to vector<8x32xf32>
    %63 = vector.shape_cast %60 : vector<8x32xf32> to vector<1x8x32xf32>
    tpu.vector_store %arg9[%c0_30, %c0_31, %c0_32], %63 {strides = array<i32>} : memref<1x8x32xf32, #tpu.memory_space<vmem>>, vector<1x8x32xf32>,
    return
  }
  func.func @transform_0(%arg0: i32) -> (i32, i32, i32) {
    %c0_i32 = arith.constant 0 : i32
    %c0_i32_0 = arith.constant 0 : i32
    %c0_i32_1 = arith.constant 0 : i32
    return %arg0, %c0_i32, %c0_i32_0 : i32, i32, i32
  }
  func.func @transform_1(%arg0: i32) -> (i32, i32) {
    %c0_i32 = arith.constant 0 : i32
    %c0_i32_0 = arith.constant 0 : i32
    %c0_i32_1 = arith.constant 0 : i32
    return %c0_i32, %c0_i32_0 : i32, i32
  }
  func.func @transform_2(%arg0: i32) -> (i32, i32) {
    %c0_i32 = arith.constant 0 : i32
    %c0_i32_0 = arith.constant 0 : i32
    %c0_i32_1 = arith.constant 0 : i32
    return %c0_i32, %c0_i32_0 : i32, i32
  }
  func.func @transform_3(%arg0: i32) -> (i32, i32) {
    %c0_i32 = arith.constant 0 : i32
    %c0_i32_0 = arith.constant 0 : i32
    %c0_i32_1 = arith.constant 0 : i32
    return %c0_i32, %c0_i32_0 : i32, i32
  }
  func.func @transform_4(%arg0: i32) -> (i32, i32) {
    %c0_i32 = arith.constant 0 : i32
    %c0_i32_0 = arith.constant 0 : i32
    %c0_i32_1 = arith.constant 0 : i32
    return %c0_i32, %c0_i32_0 : i32, i32
  }
  func.func @transform_5(%arg0: i32) -> (i32, i32) {
    %c0_i32 = arith.constant 0 : i32
    %c0_i32_0 = arith.constant 0 : i32
    %c0_i32_1 = arith.constant 0 : i32
    return %c0_i32, %c0_i32_0 : i32, i32
  }
  func.func @transform_6(%arg0: i32) -> (i32, i32) {
    %c0_i32 = arith.constant 0 : i32
    %c0_i32_0 = arith.constant 0 : i32
    %c0_i32_1 = arith.constant 0 : i32
    return %c0_i32, %c0_i32_0 : i32, i32
  }
  func.func @transform_7(%arg0: i32) -> (i32, i32, i32) {
    %c0_i32 = arith.constant 0 : i32
    %c0_i32_0 = arith.constant 0 : i32
    %c0_i32_1 = arith.constant 0 : i32
    return %arg0, %c0_i32, %c0_i32_0 : i32, i32, i32
  }
  func.func @transform_8(%arg0: i32) -> (i32, i32, i32) {
    %c0_i32 = arith.constant 0 : i32
    %c0_i32_0 = arith.constant 0 : i32
    %c0_i32_1 = arith.constant 0 : i32
    return %arg0, %c0_i32, %c0_i32_0 : i32, i32, i32
  }
}

module attributes {stable_mosaic.version = 11 : i64} {
  func.func @decoder_lstm_kernel(%arg0: i32, %arg1: memref<1x8x32xf32, #tpu.memory_space<vmem>>, %arg2: memref<1x1x16xf32, #tpu.memory_space<vmem>>, %arg3: memref<32x16xf32, #tpu.memory_space<vmem>>, %arg4: memref<16x16xf32, #tpu.memory_space<vmem>>, %arg5: memref<4x16xf32, #tpu.memory_space<vmem>>, %arg6: memref<1x16xf32, #tpu.memory_space<vmem>>, %arg7: memref<1x8x4xf32, #tpu.memory_space<vmem>>) attributes {dimension_semantics = [#tpu.dimension_semantics<parallel>], iteration_bounds = array<i64: 2>, scalar_prefetch = 0 : i64, scratch_operands = 0 : i64, tpu.core_type = #tpu.core_type<tc>, window_params = [{transform_indices = @transform_0, window_bounds = array<i64: 1, 8, 32>}, {transform_indices = @transform_1, window_bounds = array<i64: 1, 1, 16>}, {pipeline_mode = #tpu.pipeline_mode<synchronous>, transform_indices = @transform_2, window_bounds = array<i64: 32, 16>}, {pipeline_mode = #tpu.pipeline_mode<synchronous>, transform_indices = @transform_3, window_bounds = array<i64: 16, 16>}, {pipeline_mode = #tpu.pipeline_mode<synchronous>, transform_indices = @transform_4, window_bounds = array<i64: 4, 16>}, {pipeline_mode = #tpu.pipeline_mode<synchronous>, transform_indices = @transform_5, window_bounds = array<i64: 1, 16>}, {transform_indices = @transform_6, window_bounds = array<i64: 1, 8, 4>}]} {
    %c0 = arith.constant 0 : index
    %c0_0 = arith.constant 0 : index
    %c0_1 = arith.constant 0 : index
    %0 = vector.load %arg1[%c0, %c0_0, %c0_1] : memref<1x8x32xf32, #tpu.memory_space<vmem>>, vector<1x8x32xf32>
    %1 = vector.shape_cast %0 : vector<1x8x32xf32> to vector<8x32xf32>
    %c0_2 = arith.constant 0 : index
    %c0_3 = arith.constant 0 : index
    %2 = vector.load %arg3[%c0_2, %c0_3] : memref<32x16xf32, #tpu.memory_space<vmem>>, vector<32x16xf32>
    %cst = arith.constant dense<0.000000e+00> : vector<8x16xf32>
    %3 = tpu.matmul %1, %2, %cst {dimension_numbers = #tpu.dot_dimension_numbers<[1], [0], [0], [1], [0, 0, 1, 1], [], []>} : vector<8x32xf32>, vector<32x16xf32>, vector<8x16xf32> -> vector<8x16xf32>
    %c0_4 = arith.constant 0 : index
    %c0_5 = arith.constant 0 : index
    %4 = vector.load %arg6[%c0_4, %c0_5] : memref<1x16xf32, #tpu.memory_space<vmem>>, vector<1x16xf32>
    %5 = vector.broadcast %4 : vector<1x16xf32> to vector<8x16xf32>
    %6 = arith.addf %3, %5 : vector<8x16xf32>
    %c0_6 = arith.constant 0 : index
    %c0_7 = arith.constant 0 : index
    %c0_8 = arith.constant 0 : index
    %7 = vector.load %arg2[%c0_6, %c0_7, %c0_8] : memref<1x1x16xf32, #tpu.memory_space<vmem>>, vector<1x1x16xf32>
    %8 = vector.shape_cast %7 : vector<1x1x16xf32> to vector<1x16xf32>
    %c0_9 = arith.constant 0 : index
    %c0_10 = arith.constant 0 : index
    %9 = vector.load %arg4[%c0_9, %c0_10] : memref<16x16xf32, #tpu.memory_space<vmem>>, vector<16x16xf32>
    %cst_11 = arith.constant dense<0.000000e+00> : vector<1x16xf32>
    %10 = tpu.matmul %8, %9, %cst_11 {dimension_numbers = #tpu.dot_dimension_numbers<[1], [0], [0], [1], [0, 0, 1, 1], [], []>} : vector<1x16xf32>, vector<16x16xf32>, vector<1x16xf32> -> vector<1x16xf32>
    %11 = vector.broadcast %10 : vector<1x16xf32> to vector<8x16xf32>
    %12 = arith.addf %6, %11 : vector<8x16xf32>
    %c0_12 = arith.constant 0 : index
    %c0_13 = arith.constant 0 : index
    %13 = vector.load %arg5[%c0_12, %c0_13] : memref<4x16xf32, #tpu.memory_space<vmem>>, vector<4x16xf32>
    %cst_14 = arith.constant 0.000000e+00 : f32
    %14 = vector.broadcast %cst_14 : f32 to vector<1x4xf32>
    %cst_15 = arith.constant 0.000000e+00 : f32
    %15 = vector.broadcast %cst_15 : f32 to vector<1x4xf32>
    %16 = vector.extract_strided_slice %12 {offsets = [0, 0], sizes = [1, 16], strides = [1, 1]} : vector<8x16xf32> to vector<1x16xf32>
    %cst_16 = arith.constant dense<0.000000e+00> : vector<1x16xf32>
    %17 = tpu.matmul %14, %13, %cst_16 {dimension_numbers = #tpu.dot_dimension_numbers<[1], [0], [0], [1], [0, 0, 1, 1], [], []>} : vector<1x4xf32>, vector<4x16xf32>, vector<1x16xf32> -> vector<1x16xf32>
    %18 = arith.addf %16, %17 : vector<1x16xf32>
    %19 = vector.extract_strided_slice %18 {offsets = [0, 0], sizes = [1, 4], strides = [1, 1]} : vector<1x16xf32> to vector<1x4xf32>
    %cst_17 = arith.constant 5.000000e-01 : f32
    %20 = vector.broadcast %cst_17 : f32 to vector<1x4xf32>
    %21 = arith.mulf %20, %19 : vector<1x4xf32>
    %22 = math.tanh %21 : vector<1x4xf32>
    %cst_18 = arith.constant 1.000000e+00 : f32
    %23 = vector.broadcast %cst_18 : f32 to vector<1x4xf32>
    %24 = arith.addf %22, %23 : vector<1x4xf32>
    %cst_19 = arith.constant 5.000000e-01 : f32
    %25 = vector.broadcast %cst_19 : f32 to vector<1x4xf32>
    %26 = arith.mulf %25, %24 : vector<1x4xf32>
    %27 = vector.extract_strided_slice %18 {offsets = [0, 4], sizes = [1, 4], strides = [1, 1]} : vector<1x16xf32> to vector<1x4xf32>
    %cst_20 = arith.constant 5.000000e-01 : f32
    %28 = vector.broadcast %cst_20 : f32 to vector<1x4xf32>
    %29 = arith.mulf %28, %27 : vector<1x4xf32>
    %30 = math.tanh %29 : vector<1x4xf32>
    %cst_21 = arith.constant 1.000000e+00 : f32
    %31 = vector.broadcast %cst_21 : f32 to vector<1x4xf32>
    %32 = arith.addf %30, %31 : vector<1x4xf32>
    %cst_22 = arith.constant 5.000000e-01 : f32
    %33 = vector.broadcast %cst_22 : f32 to vector<1x4xf32>
    %34 = arith.mulf %33, %32 : vector<1x4xf32>
    %35 = vector.extract_strided_slice %18 {offsets = [0, 8], sizes = [1, 4], strides = [1, 1]} : vector<1x16xf32> to vector<1x4xf32>
    %36 = math.tanh %35 : vector<1x4xf32>
    %37 = vector.extract_strided_slice %18 {offsets = [0, 12], sizes = [1, 4], strides = [1, 1]} : vector<1x16xf32> to vector<1x4xf32>
    %cst_23 = arith.constant 5.000000e-01 : f32
    %38 = vector.broadcast %cst_23 : f32 to vector<1x4xf32>
    %39 = arith.mulf %38, %37 : vector<1x4xf32>
    %40 = math.tanh %39 : vector<1x4xf32>
    %cst_24 = arith.constant 1.000000e+00 : f32
    %41 = vector.broadcast %cst_24 : f32 to vector<1x4xf32>
    %42 = arith.addf %40, %41 : vector<1x4xf32>
    %cst_25 = arith.constant 5.000000e-01 : f32
    %43 = vector.broadcast %cst_25 : f32 to vector<1x4xf32>
    %44 = arith.mulf %43, %42 : vector<1x4xf32>
    %45 = arith.mulf %34, %15 : vector<1x4xf32>
    %46 = arith.mulf %26, %36 : vector<1x4xf32>
    %47 = arith.addf %45, %46 : vector<1x4xf32>
    %48 = math.tanh %47 : vector<1x4xf32>
    %49 = arith.mulf %44, %48 : vector<1x4xf32>
    %c0_26 = arith.constant 0 : index
    %c0_27 = arith.constant 0 : index
    %c0_28 = arith.constant 0 : index
    %50 = vector.load %arg7[%c0_26, %c0_27, %c0_28] : memref<1x8x4xf32, #tpu.memory_space<vmem>>, vector<1x1x4xf32>
    %51 = vector.shape_cast %50 : vector<1x1x4xf32> to vector<1x4xf32>
    %52 = vector.shape_cast %49 : vector<1x4xf32> to vector<1x1x4xf32>
    tpu.vector_store %arg7[%c0_26, %c0_27, %c0_28], %52 {strides = array<i32>} : memref<1x8x4xf32, #tpu.memory_space<vmem>>, vector<1x1x4xf32>,
    %53 = vector.extract_strided_slice %12 {offsets = [1, 0], sizes = [1, 16], strides = [1, 1]} : vector<8x16xf32> to vector<1x16xf32>
    %cst_29 = arith.constant dense<0.000000e+00> : vector<1x16xf32>
    %54 = tpu.matmul %49, %13, %cst_29 {dimension_numbers = #tpu.dot_dimension_numbers<[1], [0], [0], [1], [0, 0, 1, 1], [], []>} : vector<1x4xf32>, vector<4x16xf32>, vector<1x16xf32> -> vector<1x16xf32>
    %55 = arith.addf %53, %54 : vector<1x16xf32>
    %56 = vector.extract_strided_slice %55 {offsets = [0, 0], sizes = [1, 4], strides = [1, 1]} : vector<1x16xf32> to vector<1x4xf32>
    %cst_30 = arith.constant 5.000000e-01 : f32
    %57 = vector.broadcast %cst_30 : f32 to vector<1x4xf32>
    %58 = arith.mulf %57, %56 : vector<1x4xf32>
    %59 = math.tanh %58 : vector<1x4xf32>
    %cst_31 = arith.constant 1.000000e+00 : f32
    %60 = vector.broadcast %cst_31 : f32 to vector<1x4xf32>
    %61 = arith.addf %59, %60 : vector<1x4xf32>
    %cst_32 = arith.constant 5.000000e-01 : f32
    %62 = vector.broadcast %cst_32 : f32 to vector<1x4xf32>
    %63 = arith.mulf %62, %61 : vector<1x4xf32>
    %64 = vector.extract_strided_slice %55 {offsets = [0, 4], sizes = [1, 4], strides = [1, 1]} : vector<1x16xf32> to vector<1x4xf32>
    %cst_33 = arith.constant 5.000000e-01 : f32
    %65 = vector.broadcast %cst_33 : f32 to vector<1x4xf32>
    %66 = arith.mulf %65, %64 : vector<1x4xf32>
    %67 = math.tanh %66 : vector<1x4xf32>
    %cst_34 = arith.constant 1.000000e+00 : f32
    %68 = vector.broadcast %cst_34 : f32 to vector<1x4xf32>
    %69 = arith.addf %67, %68 : vector<1x4xf32>
    %cst_35 = arith.constant 5.000000e-01 : f32
    %70 = vector.broadcast %cst_35 : f32 to vector<1x4xf32>
    %71 = arith.mulf %70, %69 : vector<1x4xf32>
    %72 = vector.extract_strided_slice %55 {offsets = [0, 8], sizes = [1, 4], strides = [1, 1]} : vector<1x16xf32> to vector<1x4xf32>
    %73 = math.tanh %72 : vector<1x4xf32>
    %74 = vector.extract_strided_slice %55 {offsets = [0, 12], sizes = [1, 4], strides = [1, 1]} : vector<1x16xf32> to vector<1x4xf32>
    %cst_36 = arith.constant 5.000000e-01 : f32
    %75 = vector.broadcast %cst_36 : f32 to vector<1x4xf32>
    %76 = arith.mulf %75, %74 : vector<1x4xf32>
    %77 = math.tanh %76 : vector<1x4xf32>
    %cst_37 = arith.constant 1.000000e+00 : f32
    %78 = vector.broadcast %cst_37 : f32 to vector<1x4xf32>
    %79 = arith.addf %77, %78 : vector<1x4xf32>
    %cst_38 = arith.constant 5.000000e-01 : f32
    %80 = vector.broadcast %cst_38 : f32 to vector<1x4xf32>
    %81 = arith.mulf %80, %79 : vector<1x4xf32>
    %82 = arith.mulf %71, %47 : vector<1x4xf32>
    %83 = arith.mulf %63, %73 : vector<1x4xf32>
    %84 = arith.addf %82, %83 : vector<1x4xf32>
    %85 = math.tanh %84 : vector<1x4xf32>
    %86 = arith.mulf %81, %85 : vector<1x4xf32>
    %c0_39 = arith.constant 0 : index
    %c1 = arith.constant 1 : index
    %c0_40 = arith.constant 0 : index
    %87 = vector.load %arg7[%c0_39, %c1, %c0_40] : memref<1x8x4xf32, #tpu.memory_space<vmem>>, vector<1x1x4xf32>
    %88 = vector.shape_cast %87 : vector<1x1x4xf32> to vector<1x4xf32>
    %89 = vector.shape_cast %86 : vector<1x4xf32> to vector<1x1x4xf32>
    tpu.vector_store %arg7[%c0_39, %c1, %c0_40], %89 {strides = array<i32>} : memref<1x8x4xf32, #tpu.memory_space<vmem>>, vector<1x1x4xf32>,
    %90 = vector.extract_strided_slice %12 {offsets = [2, 0], sizes = [1, 16], strides = [1, 1]} : vector<8x16xf32> to vector<1x16xf32>
    %cst_41 = arith.constant dense<0.000000e+00> : vector<1x16xf32>
    %91 = tpu.matmul %86, %13, %cst_41 {dimension_numbers = #tpu.dot_dimension_numbers<[1], [0], [0], [1], [0, 0, 1, 1], [], []>} : vector<1x4xf32>, vector<4x16xf32>, vector<1x16xf32> -> vector<1x16xf32>
    %92 = arith.addf %90, %91 : vector<1x16xf32>
    %93 = vector.extract_strided_slice %92 {offsets = [0, 0], sizes = [1, 4], strides = [1, 1]} : vector<1x16xf32> to vector<1x4xf32>
    %cst_42 = arith.constant 5.000000e-01 : f32
    %94 = vector.broadcast %cst_42 : f32 to vector<1x4xf32>
    %95 = arith.mulf %94, %93 : vector<1x4xf32>
    %96 = math.tanh %95 : vector<1x4xf32>
    %cst_43 = arith.constant 1.000000e+00 : f32
    %97 = vector.broadcast %cst_43 : f32 to vector<1x4xf32>
    %98 = arith.addf %96, %97 : vector<1x4xf32>
    %cst_44 = arith.constant 5.000000e-01 : f32
    %99 = vector.broadcast %cst_44 : f32 to vector<1x4xf32>
    %100 = arith.mulf %99, %98 : vector<1x4xf32>
    %101 = vector.extract_strided_slice %92 {offsets = [0, 4], sizes = [1, 4], strides = [1, 1]} : vector<1x16xf32> to vector<1x4xf32>
    %cst_45 = arith.constant 5.000000e-01 : f32
    %102 = vector.broadcast %cst_45 : f32 to vector<1x4xf32>
    %103 = arith.mulf %102, %101 : vector<1x4xf32>
    %104 = math.tanh %103 : vector<1x4xf32>
    %cst_46 = arith.constant 1.000000e+00 : f32
    %105 = vector.broadcast %cst_46 : f32 to vector<1x4xf32>
    %106 = arith.addf %104, %105 : vector<1x4xf32>
    %cst_47 = arith.constant 5.000000e-01 : f32
    %107 = vector.broadcast %cst_47 : f32 to vector<1x4xf32>
    %108 = arith.mulf %107, %106 : vector<1x4xf32>
    %109 = vector.extract_strided_slice %92 {offsets = [0, 8], sizes = [1, 4], strides = [1, 1]} : vector<1x16xf32> to vector<1x4xf32>
    %110 = math.tanh %109 : vector<1x4xf32>
    %111 = vector.extract_strided_slice %92 {offsets = [0, 12], sizes = [1, 4], strides = [1, 1]} : vector<1x16xf32> to vector<1x4xf32>
    %cst_48 = arith.constant 5.000000e-01 : f32
    %112 = vector.broadcast %cst_48 : f32 to vector<1x4xf32>
    %113 = arith.mulf %112, %111 : vector<1x4xf32>
    %114 = math.tanh %113 : vector<1x4xf32>
    %cst_49 = arith.constant 1.000000e+00 : f32
    %115 = vector.broadcast %cst_49 : f32 to vector<1x4xf32>
    %116 = arith.addf %114, %115 : vector<1x4xf32>
    %cst_50 = arith.constant 5.000000e-01 : f32
    %117 = vector.broadcast %cst_50 : f32 to vector<1x4xf32>
    %118 = arith.mulf %117, %116 : vector<1x4xf32>
    %119 = arith.mulf %108, %84 : vector<1x4xf32>
    %120 = arith.mulf %100, %110 : vector<1x4xf32>
    %121 = arith.addf %119, %120 : vector<1x4xf32>
    %122 = math.tanh %121 : vector<1x4xf32>
    %123 = arith.mulf %118, %122 : vector<1x4xf32>
    %c0_51 = arith.constant 0 : index
    %c2 = arith.constant 2 : index
    %c0_52 = arith.constant 0 : index
    %124 = vector.load %arg7[%c0_51, %c2, %c0_52] : memref<1x8x4xf32, #tpu.memory_space<vmem>>, vector<1x1x4xf32>
    %125 = vector.shape_cast %124 : vector<1x1x4xf32> to vector<1x4xf32>
    %126 = vector.shape_cast %123 : vector<1x4xf32> to vector<1x1x4xf32>
    tpu.vector_store %arg7[%c0_51, %c2, %c0_52], %126 {strides = array<i32>} : memref<1x8x4xf32, #tpu.memory_space<vmem>>, vector<1x1x4xf32>,
    %127 = vector.extract_strided_slice %12 {offsets = [3, 0], sizes = [1, 16], strides = [1, 1]} : vector<8x16xf32> to vector<1x16xf32>
    %cst_53 = arith.constant dense<0.000000e+00> : vector<1x16xf32>
    %128 = tpu.matmul %123, %13, %cst_53 {dimension_numbers = #tpu.dot_dimension_numbers<[1], [0], [0], [1], [0, 0, 1, 1], [], []>} : vector<1x4xf32>, vector<4x16xf32>, vector<1x16xf32> -> vector<1x16xf32>
    %129 = arith.addf %127, %128 : vector<1x16xf32>
    %130 = vector.extract_strided_slice %129 {offsets = [0, 0], sizes = [1, 4], strides = [1, 1]} : vector<1x16xf32> to vector<1x4xf32>
    %cst_54 = arith.constant 5.000000e-01 : f32
    %131 = vector.broadcast %cst_54 : f32 to vector<1x4xf32>
    %132 = arith.mulf %131, %130 : vector<1x4xf32>
    %133 = math.tanh %132 : vector<1x4xf32>
    %cst_55 = arith.constant 1.000000e+00 : f32
    %134 = vector.broadcast %cst_55 : f32 to vector<1x4xf32>
    %135 = arith.addf %133, %134 : vector<1x4xf32>
    %cst_56 = arith.constant 5.000000e-01 : f32
    %136 = vector.broadcast %cst_56 : f32 to vector<1x4xf32>
    %137 = arith.mulf %136, %135 : vector<1x4xf32>
    %138 = vector.extract_strided_slice %129 {offsets = [0, 4], sizes = [1, 4], strides = [1, 1]} : vector<1x16xf32> to vector<1x4xf32>
    %cst_57 = arith.constant 5.000000e-01 : f32
    %139 = vector.broadcast %cst_57 : f32 to vector<1x4xf32>
    %140 = arith.mulf %139, %138 : vector<1x4xf32>
    %141 = math.tanh %140 : vector<1x4xf32>
    %cst_58 = arith.constant 1.000000e+00 : f32
    %142 = vector.broadcast %cst_58 : f32 to vector<1x4xf32>
    %143 = arith.addf %141, %142 : vector<1x4xf32>
    %cst_59 = arith.constant 5.000000e-01 : f32
    %144 = vector.broadcast %cst_59 : f32 to vector<1x4xf32>
    %145 = arith.mulf %144, %143 : vector<1x4xf32>
    %146 = vector.extract_strided_slice %129 {offsets = [0, 8], sizes = [1, 4], strides = [1, 1]} : vector<1x16xf32> to vector<1x4xf32>
    %147 = math.tanh %146 : vector<1x4xf32>
    %148 = vector.extract_strided_slice %129 {offsets = [0, 12], sizes = [1, 4], strides = [1, 1]} : vector<1x16xf32> to vector<1x4xf32>
    %cst_60 = arith.constant 5.000000e-01 : f32
    %149 = vector.broadcast %cst_60 : f32 to vector<1x4xf32>
    %150 = arith.mulf %149, %148 : vector<1x4xf32>
    %151 = math.tanh %150 : vector<1x4xf32>
    %cst_61 = arith.constant 1.000000e+00 : f32
    %152 = vector.broadcast %cst_61 : f32 to vector<1x4xf32>
    %153 = arith.addf %151, %152 : vector<1x4xf32>
    %cst_62 = arith.constant 5.000000e-01 : f32
    %154 = vector.broadcast %cst_62 : f32 to vector<1x4xf32>
    %155 = arith.mulf %154, %153 : vector<1x4xf32>
    %156 = arith.mulf %145, %121 : vector<1x4xf32>
    %157 = arith.mulf %137, %147 : vector<1x4xf32>
    %158 = arith.addf %156, %157 : vector<1x4xf32>
    %159 = math.tanh %158 : vector<1x4xf32>
    %160 = arith.mulf %155, %159 : vector<1x4xf32>
    %c0_63 = arith.constant 0 : index
    %c3 = arith.constant 3 : index
    %c0_64 = arith.constant 0 : index
    %161 = vector.load %arg7[%c0_63, %c3, %c0_64] : memref<1x8x4xf32, #tpu.memory_space<vmem>>, vector<1x1x4xf32>
    %162 = vector.shape_cast %161 : vector<1x1x4xf32> to vector<1x4xf32>
    %163 = vector.shape_cast %160 : vector<1x4xf32> to vector<1x1x4xf32>
    tpu.vector_store %arg7[%c0_63, %c3, %c0_64], %163 {strides = array<i32>} : memref<1x8x4xf32, #tpu.memory_space<vmem>>, vector<1x1x4xf32>,
    %164 = vector.extract_strided_slice %12 {offsets = [4, 0], sizes = [1, 16], strides = [1, 1]} : vector<8x16xf32> to vector<1x16xf32>
    %cst_65 = arith.constant dense<0.000000e+00> : vector<1x16xf32>
    %165 = tpu.matmul %160, %13, %cst_65 {dimension_numbers = #tpu.dot_dimension_numbers<[1], [0], [0], [1], [0, 0, 1, 1], [], []>} : vector<1x4xf32>, vector<4x16xf32>, vector<1x16xf32> -> vector<1x16xf32>
    %166 = arith.addf %164, %165 : vector<1x16xf32>
    %167 = vector.extract_strided_slice %166 {offsets = [0, 0], sizes = [1, 4], strides = [1, 1]} : vector<1x16xf32> to vector<1x4xf32>
    %cst_66 = arith.constant 5.000000e-01 : f32
    %168 = vector.broadcast %cst_66 : f32 to vector<1x4xf32>
    %169 = arith.mulf %168, %167 : vector<1x4xf32>
    %170 = math.tanh %169 : vector<1x4xf32>
    %cst_67 = arith.constant 1.000000e+00 : f32
    %171 = vector.broadcast %cst_67 : f32 to vector<1x4xf32>
    %172 = arith.addf %170, %171 : vector<1x4xf32>
    %cst_68 = arith.constant 5.000000e-01 : f32
    %173 = vector.broadcast %cst_68 : f32 to vector<1x4xf32>
    %174 = arith.mulf %173, %172 : vector<1x4xf32>
    %175 = vector.extract_strided_slice %166 {offsets = [0, 4], sizes = [1, 4], strides = [1, 1]} : vector<1x16xf32> to vector<1x4xf32>
    %cst_69 = arith.constant 5.000000e-01 : f32
    %176 = vector.broadcast %cst_69 : f32 to vector<1x4xf32>
    %177 = arith.mulf %176, %175 : vector<1x4xf32>
    %178 = math.tanh %177 : vector<1x4xf32>
    %cst_70 = arith.constant 1.000000e+00 : f32
    %179 = vector.broadcast %cst_70 : f32 to vector<1x4xf32>
    %180 = arith.addf %178, %179 : vector<1x4xf32>
    %cst_71 = arith.constant 5.000000e-01 : f32
    %181 = vector.broadcast %cst_71 : f32 to vector<1x4xf32>
    %182 = arith.mulf %181, %180 : vector<1x4xf32>
    %183 = vector.extract_strided_slice %166 {offsets = [0, 8], sizes = [1, 4], strides = [1, 1]} : vector<1x16xf32> to vector<1x4xf32>
    %184 = math.tanh %183 : vector<1x4xf32>
    %185 = vector.extract_strided_slice %166 {offsets = [0, 12], sizes = [1, 4], strides = [1, 1]} : vector<1x16xf32> to vector<1x4xf32>
    %cst_72 = arith.constant 5.000000e-01 : f32
    %186 = vector.broadcast %cst_72 : f32 to vector<1x4xf32>
    %187 = arith.mulf %186, %185 : vector<1x4xf32>
    %188 = math.tanh %187 : vector<1x4xf32>
    %cst_73 = arith.constant 1.000000e+00 : f32
    %189 = vector.broadcast %cst_73 : f32 to vector<1x4xf32>
    %190 = arith.addf %188, %189 : vector<1x4xf32>
    %cst_74 = arith.constant 5.000000e-01 : f32
    %191 = vector.broadcast %cst_74 : f32 to vector<1x4xf32>
    %192 = arith.mulf %191, %190 : vector<1x4xf32>
    %193 = arith.mulf %182, %158 : vector<1x4xf32>
    %194 = arith.mulf %174, %184 : vector<1x4xf32>
    %195 = arith.addf %193, %194 : vector<1x4xf32>
    %196 = math.tanh %195 : vector<1x4xf32>
    %197 = arith.mulf %192, %196 : vector<1x4xf32>
    %c0_75 = arith.constant 0 : index
    %c4 = arith.constant 4 : index
    %c0_76 = arith.constant 0 : index
    %198 = vector.load %arg7[%c0_75, %c4, %c0_76] : memref<1x8x4xf32, #tpu.memory_space<vmem>>, vector<1x1x4xf32>
    %199 = vector.shape_cast %198 : vector<1x1x4xf32> to vector<1x4xf32>
    %200 = vector.shape_cast %197 : vector<1x4xf32> to vector<1x1x4xf32>
    tpu.vector_store %arg7[%c0_75, %c4, %c0_76], %200 {strides = array<i32>} : memref<1x8x4xf32, #tpu.memory_space<vmem>>, vector<1x1x4xf32>,
    %201 = vector.extract_strided_slice %12 {offsets = [5, 0], sizes = [1, 16], strides = [1, 1]} : vector<8x16xf32> to vector<1x16xf32>
    %cst_77 = arith.constant dense<0.000000e+00> : vector<1x16xf32>
    %202 = tpu.matmul %197, %13, %cst_77 {dimension_numbers = #tpu.dot_dimension_numbers<[1], [0], [0], [1], [0, 0, 1, 1], [], []>} : vector<1x4xf32>, vector<4x16xf32>, vector<1x16xf32> -> vector<1x16xf32>
    %203 = arith.addf %201, %202 : vector<1x16xf32>
    %204 = vector.extract_strided_slice %203 {offsets = [0, 0], sizes = [1, 4], strides = [1, 1]} : vector<1x16xf32> to vector<1x4xf32>
    %cst_78 = arith.constant 5.000000e-01 : f32
    %205 = vector.broadcast %cst_78 : f32 to vector<1x4xf32>
    %206 = arith.mulf %205, %204 : vector<1x4xf32>
    %207 = math.tanh %206 : vector<1x4xf32>
    %cst_79 = arith.constant 1.000000e+00 : f32
    %208 = vector.broadcast %cst_79 : f32 to vector<1x4xf32>
    %209 = arith.addf %207, %208 : vector<1x4xf32>
    %cst_80 = arith.constant 5.000000e-01 : f32
    %210 = vector.broadcast %cst_80 : f32 to vector<1x4xf32>
    %211 = arith.mulf %210, %209 : vector<1x4xf32>
    %212 = vector.extract_strided_slice %203 {offsets = [0, 4], sizes = [1, 4], strides = [1, 1]} : vector<1x16xf32> to vector<1x4xf32>
    %cst_81 = arith.constant 5.000000e-01 : f32
    %213 = vector.broadcast %cst_81 : f32 to vector<1x4xf32>
    %214 = arith.mulf %213, %212 : vector<1x4xf32>
    %215 = math.tanh %214 : vector<1x4xf32>
    %cst_82 = arith.constant 1.000000e+00 : f32
    %216 = vector.broadcast %cst_82 : f32 to vector<1x4xf32>
    %217 = arith.addf %215, %216 : vector<1x4xf32>
    %cst_83 = arith.constant 5.000000e-01 : f32
    %218 = vector.broadcast %cst_83 : f32 to vector<1x4xf32>
    %219 = arith.mulf %218, %217 : vector<1x4xf32>
    %220 = vector.extract_strided_slice %203 {offsets = [0, 8], sizes = [1, 4], strides = [1, 1]} : vector<1x16xf32> to vector<1x4xf32>
    %221 = math.tanh %220 : vector<1x4xf32>
    %222 = vector.extract_strided_slice %203 {offsets = [0, 12], sizes = [1, 4], strides = [1, 1]} : vector<1x16xf32> to vector<1x4xf32>
    %cst_84 = arith.constant 5.000000e-01 : f32
    %223 = vector.broadcast %cst_84 : f32 to vector<1x4xf32>
    %224 = arith.mulf %223, %222 : vector<1x4xf32>
    %225 = math.tanh %224 : vector<1x4xf32>
    %cst_85 = arith.constant 1.000000e+00 : f32
    %226 = vector.broadcast %cst_85 : f32 to vector<1x4xf32>
    %227 = arith.addf %225, %226 : vector<1x4xf32>
    %cst_86 = arith.constant 5.000000e-01 : f32
    %228 = vector.broadcast %cst_86 : f32 to vector<1x4xf32>
    %229 = arith.mulf %228, %227 : vector<1x4xf32>
    %230 = arith.mulf %219, %195 : vector<1x4xf32>
    %231 = arith.mulf %211, %221 : vector<1x4xf32>
    %232 = arith.addf %230, %231 : vector<1x4xf32>
    %233 = math.tanh %232 : vector<1x4xf32>
    %234 = arith.mulf %229, %233 : vector<1x4xf32>
    %c0_87 = arith.constant 0 : index
    %c5 = arith.constant 5 : index
    %c0_88 = arith.constant 0 : index
    %235 = vector.load %arg7[%c0_87, %c5, %c0_88] : memref<1x8x4xf32, #tpu.memory_space<vmem>>, vector<1x1x4xf32>
    %236 = vector.shape_cast %235 : vector<1x1x4xf32> to vector<1x4xf32>
    %237 = vector.shape_cast %234 : vector<1x4xf32> to vector<1x1x4xf32>
    tpu.vector_store %arg7[%c0_87, %c5, %c0_88], %237 {strides = array<i32>} : memref<1x8x4xf32, #tpu.memory_space<vmem>>, vector<1x1x4xf32>,
    %238 = vector.extract_strided_slice %12 {offsets = [6, 0], sizes = [1, 16], strides = [1, 1]} : vector<8x16xf32> to vector<1x16xf32>
    %cst_89 = arith.constant dense<0.000000e+00> : vector<1x16xf32>
    %239 = tpu.matmul %234, %13, %cst_89 {dimension_numbers = #tpu.dot_dimension_numbers<[1], [0], [0], [1], [0, 0, 1, 1], [], []>} : vector<1x4xf32>, vector<4x16xf32>, vector<1x16xf32> -> vector<1x16xf32>
    %240 = arith.addf %238, %239 : vector<1x16xf32>
    %241 = vector.extract_strided_slice %240 {offsets = [0, 0], sizes = [1, 4], strides = [1, 1]} : vector<1x16xf32> to vector<1x4xf32>
    %cst_90 = arith.constant 5.000000e-01 : f32
    %242 = vector.broadcast %cst_90 : f32 to vector<1x4xf32>
    %243 = arith.mulf %242, %241 : vector<1x4xf32>
    %244 = math.tanh %243 : vector<1x4xf32>
    %cst_91 = arith.constant 1.000000e+00 : f32
    %245 = vector.broadcast %cst_91 : f32 to vector<1x4xf32>
    %246 = arith.addf %244, %245 : vector<1x4xf32>
    %cst_92 = arith.constant 5.000000e-01 : f32
    %247 = vector.broadcast %cst_92 : f32 to vector<1x4xf32>
    %248 = arith.mulf %247, %246 : vector<1x4xf32>
    %249 = vector.extract_strided_slice %240 {offsets = [0, 4], sizes = [1, 4], strides = [1, 1]} : vector<1x16xf32> to vector<1x4xf32>
    %cst_93 = arith.constant 5.000000e-01 : f32
    %250 = vector.broadcast %cst_93 : f32 to vector<1x4xf32>
    %251 = arith.mulf %250, %249 : vector<1x4xf32>
    %252 = math.tanh %251 : vector<1x4xf32>
    %cst_94 = arith.constant 1.000000e+00 : f32
    %253 = vector.broadcast %cst_94 : f32 to vector<1x4xf32>
    %254 = arith.addf %252, %253 : vector<1x4xf32>
    %cst_95 = arith.constant 5.000000e-01 : f32
    %255 = vector.broadcast %cst_95 : f32 to vector<1x4xf32>
    %256 = arith.mulf %255, %254 : vector<1x4xf32>
    %257 = vector.extract_strided_slice %240 {offsets = [0, 8], sizes = [1, 4], strides = [1, 1]} : vector<1x16xf32> to vector<1x4xf32>
    %258 = math.tanh %257 : vector<1x4xf32>
    %259 = vector.extract_strided_slice %240 {offsets = [0, 12], sizes = [1, 4], strides = [1, 1]} : vector<1x16xf32> to vector<1x4xf32>
    %cst_96 = arith.constant 5.000000e-01 : f32
    %260 = vector.broadcast %cst_96 : f32 to vector<1x4xf32>
    %261 = arith.mulf %260, %259 : vector<1x4xf32>
    %262 = math.tanh %261 : vector<1x4xf32>
    %cst_97 = arith.constant 1.000000e+00 : f32
    %263 = vector.broadcast %cst_97 : f32 to vector<1x4xf32>
    %264 = arith.addf %262, %263 : vector<1x4xf32>
    %cst_98 = arith.constant 5.000000e-01 : f32
    %265 = vector.broadcast %cst_98 : f32 to vector<1x4xf32>
    %266 = arith.mulf %265, %264 : vector<1x4xf32>
    %267 = arith.mulf %256, %232 : vector<1x4xf32>
    %268 = arith.mulf %248, %258 : vector<1x4xf32>
    %269 = arith.addf %267, %268 : vector<1x4xf32>
    %270 = math.tanh %269 : vector<1x4xf32>
    %271 = arith.mulf %266, %270 : vector<1x4xf32>
    %c0_99 = arith.constant 0 : index
    %c6 = arith.constant 6 : index
    %c0_100 = arith.constant 0 : index
    %272 = vector.load %arg7[%c0_99, %c6, %c0_100] : memref<1x8x4xf32, #tpu.memory_space<vmem>>, vector<1x1x4xf32>
    %273 = vector.shape_cast %272 : vector<1x1x4xf32> to vector<1x4xf32>
    %274 = vector.shape_cast %271 : vector<1x4xf32> to vector<1x1x4xf32>
    tpu.vector_store %arg7[%c0_99, %c6, %c0_100], %274 {strides = array<i32>} : memref<1x8x4xf32, #tpu.memory_space<vmem>>, vector<1x1x4xf32>,
    %275 = vector.extract_strided_slice %12 {offsets = [7, 0], sizes = [1, 16], strides = [1, 1]} : vector<8x16xf32> to vector<1x16xf32>
    %cst_101 = arith.constant dense<0.000000e+00> : vector<1x16xf32>
    %276 = tpu.matmul %271, %13, %cst_101 {dimension_numbers = #tpu.dot_dimension_numbers<[1], [0], [0], [1], [0, 0, 1, 1], [], []>} : vector<1x4xf32>, vector<4x16xf32>, vector<1x16xf32> -> vector<1x16xf32>
    %277 = arith.addf %275, %276 : vector<1x16xf32>
    %278 = vector.extract_strided_slice %277 {offsets = [0, 0], sizes = [1, 4], strides = [1, 1]} : vector<1x16xf32> to vector<1x4xf32>
    %cst_102 = arith.constant 5.000000e-01 : f32
    %279 = vector.broadcast %cst_102 : f32 to vector<1x4xf32>
    %280 = arith.mulf %279, %278 : vector<1x4xf32>
    %281 = math.tanh %280 : vector<1x4xf32>
    %cst_103 = arith.constant 1.000000e+00 : f32
    %282 = vector.broadcast %cst_103 : f32 to vector<1x4xf32>
    %283 = arith.addf %281, %282 : vector<1x4xf32>
    %cst_104 = arith.constant 5.000000e-01 : f32
    %284 = vector.broadcast %cst_104 : f32 to vector<1x4xf32>
    %285 = arith.mulf %284, %283 : vector<1x4xf32>
    %286 = vector.extract_strided_slice %277 {offsets = [0, 4], sizes = [1, 4], strides = [1, 1]} : vector<1x16xf32> to vector<1x4xf32>
    %cst_105 = arith.constant 5.000000e-01 : f32
    %287 = vector.broadcast %cst_105 : f32 to vector<1x4xf32>
    %288 = arith.mulf %287, %286 : vector<1x4xf32>
    %289 = math.tanh %288 : vector<1x4xf32>
    %cst_106 = arith.constant 1.000000e+00 : f32
    %290 = vector.broadcast %cst_106 : f32 to vector<1x4xf32>
    %291 = arith.addf %289, %290 : vector<1x4xf32>
    %cst_107 = arith.constant 5.000000e-01 : f32
    %292 = vector.broadcast %cst_107 : f32 to vector<1x4xf32>
    %293 = arith.mulf %292, %291 : vector<1x4xf32>
    %294 = vector.extract_strided_slice %277 {offsets = [0, 8], sizes = [1, 4], strides = [1, 1]} : vector<1x16xf32> to vector<1x4xf32>
    %295 = math.tanh %294 : vector<1x4xf32>
    %296 = vector.extract_strided_slice %277 {offsets = [0, 12], sizes = [1, 4], strides = [1, 1]} : vector<1x16xf32> to vector<1x4xf32>
    %cst_108 = arith.constant 5.000000e-01 : f32
    %297 = vector.broadcast %cst_108 : f32 to vector<1x4xf32>
    %298 = arith.mulf %297, %296 : vector<1x4xf32>
    %299 = math.tanh %298 : vector<1x4xf32>
    %cst_109 = arith.constant 1.000000e+00 : f32
    %300 = vector.broadcast %cst_109 : f32 to vector<1x4xf32>
    %301 = arith.addf %299, %300 : vector<1x4xf32>
    %cst_110 = arith.constant 5.000000e-01 : f32
    %302 = vector.broadcast %cst_110 : f32 to vector<1x4xf32>
    %303 = arith.mulf %302, %301 : vector<1x4xf32>
    %304 = arith.mulf %293, %269 : vector<1x4xf32>
    %305 = arith.mulf %285, %295 : vector<1x4xf32>
    %306 = arith.addf %304, %305 : vector<1x4xf32>
    %307 = math.tanh %306 : vector<1x4xf32>
    %308 = arith.mulf %303, %307 : vector<1x4xf32>
    %c0_111 = arith.constant 0 : index
    %c7 = arith.constant 7 : index
    %c0_112 = arith.constant 0 : index
    %309 = vector.load %arg7[%c0_111, %c7, %c0_112] : memref<1x8x4xf32, #tpu.memory_space<vmem>>, vector<1x1x4xf32>
    %310 = vector.shape_cast %309 : vector<1x1x4xf32> to vector<1x4xf32>
    %311 = vector.shape_cast %308 : vector<1x4xf32> to vector<1x1x4xf32>
    tpu.vector_store %arg7[%c0_111, %c7, %c0_112], %311 {strides = array<i32>} : memref<1x8x4xf32, #tpu.memory_space<vmem>>, vector<1x1x4xf32>,
    return
  }
  func.func @transform_0(%arg0: i32) -> (i32, i32, i32) {
    %c0_i32 = arith.constant 0 : i32
    %c0_i32_0 = arith.constant 0 : i32
    %c0_i32_1 = arith.constant 0 : i32
    return %arg0, %c0_i32, %c0_i32_0 : i32, i32, i32
  }
  func.func @transform_1(%arg0: i32) -> (i32, i32, i32) {
    %c0_i32 = arith.constant 0 : i32
    %c0_i32_0 = arith.constant 0 : i32
    %c0_i32_1 = arith.constant 0 : i32
    return %arg0, %c0_i32, %c0_i32_0 : i32, i32, i32
  }
  func.func @transform_2(%arg0: i32) -> (i32, i32) {
    %c0_i32 = arith.constant 0 : i32
    %c0_i32_0 = arith.constant 0 : i32
    %c0_i32_1 = arith.constant 0 : i32
    return %c0_i32, %c0_i32_0 : i32, i32
  }
  func.func @transform_3(%arg0: i32) -> (i32, i32) {
    %c0_i32 = arith.constant 0 : i32
    %c0_i32_0 = arith.constant 0 : i32
    %c0_i32_1 = arith.constant 0 : i32
    return %c0_i32, %c0_i32_0 : i32, i32
  }
  func.func @transform_4(%arg0: i32) -> (i32, i32) {
    %c0_i32 = arith.constant 0 : i32
    %c0_i32_0 = arith.constant 0 : i32
    %c0_i32_1 = arith.constant 0 : i32
    return %c0_i32, %c0_i32_0 : i32, i32
  }
  func.func @transform_5(%arg0: i32) -> (i32, i32) {
    %c0_i32 = arith.constant 0 : i32
    %c0_i32_0 = arith.constant 0 : i32
    %c0_i32_1 = arith.constant 0 : i32
    return %c0_i32, %c0_i32_0 : i32, i32
  }
  func.func @transform_6(%arg0: i32) -> (i32, i32, i32) {
    %c0_i32 = arith.constant 0 : i32
    %c0_i32_0 = arith.constant 0 : i32
    %c0_i32_1 = arith.constant 0 : i32
    return %arg0, %c0_i32, %c0_i32_0 : i32, i32, i32
  }
}

</mosaic_0001>

<bundles_post_ra>
// kernel: smavra_forward.3
= control target key start
LH: loop header
LB: loop body
LE: loop exit
PB: predicated region body
PF: predicated region fallthrough
CT: control target
= control target key end

     0   :  { %14 = vsyncpa [#allocation3], 0  ;;  %s1574_s0 = inlined_call_operand.vmem [shape: f32[2,8,4], index: 0, kind: input, shape index: {}]   ;;  %s1575_s1 = inlined_call_operand.hbm [shape: f32[4,128], index: 1, kind: input, shape index: {}]   ;;  %s1576_s2 = inlined_call_operand.hbm [shape: f32[32,128], index: 2, kind: input, shape index: {}]   ;;  %s1577_s3 = inlined_call_operand.hbm [shape: f32[1,128], index: 3, kind: input, shape index: {}]   ;;  %s1578_s4 = inlined_call_operand.hbm [shape: f32[32,32], index: 4, kind: input, shape index: {}]   ;;  %s1579_s5 = inlined_call_operand.vmem [shape: f32[1,32], index: 5, kind: input, shape index: {}]   ;;  %s1580_s6 = inlined_call_operand.vmem [shape: f32[2,1,16], index: 6, kind: input, shape index: {}]   ;;  %s1581_s7 = inlined_call_operand.vmem [shape: f32[2,8,32], index: 7, kind: output, shape index: {0}]   ;;  %s1582_s8 = inlined_call_operand.vmem [shape: f32[2,1,16], index: 8, kind: output, shape index: {1}]  }
   0x1   :  { %15 = vsyncpa [#allocation5], 0 }
   0x2   :  { %16 = vsyncpa [#allocation8], 0  ;;  %s1401_s27 = smov 0  }
   0x3 LB: > { %s259_s30 = sshll.u32 %s1576_s2, 4  ;;  %s1410_s9 = sadd.s32 4294967295, %s1343_s27   ;;  %s1343_s27 = sphi %s1401_s27, %s22_s27   ;;  %s260_s30 = int_to_ptr.hbm [resolvable:$true] %s259_s30 }
   0x4   : > { %p1072_p0 = scmp.ge.s32.totalorder %s1343_s27, 1  ;;  %p236_p1 = scmp.lt.s32.totalorder %s1343_s27, 3 }
   0x5   : > { %p1126_p2 = scmp.eq.s32.totalorder %s1410_s9, 0  ;;  %s1345_s11 = smov [#allocation4]  }
   0x6   : > { %p1415_p3 = pnand %p1072_p0, %p236_p1  ;;  %s261_s12 = sshll.u32 %s1345_s11, 4  ;;  %s262_s12 = int_to_ptr.vmem [resolvable:$true] %s261_s12 }
   0x7   : > { %s248_s15 = sshll.u32 %s1575_s1, 4  ;;  %s1346_s17 = smov [#allocation2]   ;;  %s249_s15 = int_to_ptr.hbm [resolvable:$true] %s248_s15 }
   0x8   : > { %p1113_p4 = pneg %p1415_p3  ;;  %s250_s18 = sshll.u32 %s1346_s17, 4  ;;  %s251_s18 = int_to_ptr.vmem [resolvable:$true] %s250_s18 }
   0x9   : > { %s274_s21 = sshll.u32 %s1577_s3, 4  ;;  %s1347_s22 = smov 128   ;;  %s275_s21 = int_to_ptr.hbm [resolvable:$true] %s274_s21 }
   0xa   : > { %p1426_p5 = pnand %p1126_p2, %p1113_p4  ;;  %s1348_s23 = smov 8  }
   0xb   : > { %s1349_s24 = smov [#allocation6]   ;;  %s285_s29 = sshll.u32 %s1578_s4, 4  ;;  %s286_s29 = int_to_ptr.hbm [resolvable:$true] %s285_s29 }
   0xc   : > { %1119 = dma.hbm_to_vmem [thread:$0]  (!%p1426_p5), %s260_s30, 512, %s262_s12, [#allocation5], %s1347_s22, %s1347_s22, %s1348_s23  }
   0xd   : > { %1116 = dma.hbm_to_vmem [thread:$0]  (!%p1426_p5), %s249_s15, 64, %s251_s18, [#allocation3]  }
   0xe   : > { %s276_s25 = sshll.u32 %s1349_s24, 4  ;;  %s1350_s11 = smov [#allocation7]   ;;  %s277_s25 = int_to_ptr.vmem [resolvable:$true] %s276_s25 }
   0xf   : > { %1122 = dma.hbm_to_vmem [thread:$0]  (!%p1426_p5), %s275_s21, 16, %s277_s25, [#allocation5]  }
  0x10   : > { %s287_s13 = sshll.u32 %s1350_s11, 4  ;;  %319 = sbr.rel (%p1415_p3) target bundleno = 4975 (0x136f), region = 48  ;;  %s288_s13 = int_to_ptr.vmem [resolvable:$true] %s287_s13 }
  0x11   : > { %1125 = dma.hbm_to_vmem [thread:$0]  (!%p1426_p5), %s286_s29, 512, %s288_s13, [#allocation8], %s1347_s22, %s1347_s22, %s1348_s23  }
  0x15   : > { %1330 = dma.done.wait (%p1126_p2), [#allocation3], 64  }
  0x16   : > { %1332 = vsyncadd (%p1126_p2), [#allocation3], 4294967232 }
  0x17   : > { %1334 = dma.done.wait (%p1126_p2), [#allocation5], 528  }
  0x18   : > { %1336 = vsyncadd (%p1126_p2), [#allocation5], 4294966768 }
  0x19   : > { %1338 = dma.done.wait (%p1126_p2), [#allocation8], 512  }
  0x1a   : > { %1340 = vsyncadd (%p1126_p2), [#allocation8], 4294966784  ;;  %p373_p6 = scmp.lt.s32.totalorder %s1410_s9, 1  ;;  %vm397_vm0 = vcmask 1043456   ;;  %vm393_vm1 = vcmask 31744   ;;  %v424_v0 = vld [vmem:[#allocation4 + $0x18] sm:$0xff] }
  0x1b   : > { %v423_v1 = vld [vmem:[#allocation4 + $0x10] sm:$0xff]  ;;  %v388_v2 = vld [vmem:[#allocation2] sm:$0xf]  ;;  %441 = vmatpush.msra.mxu1 %v424_v0  ;;  %v422_v4 = vld [vmem:[#allocation4 + $0x8] sm:$0xff]  ;;  %492 = vmatpush.msra.mxu2 %v424_v0  ;;  %v1351_v6 = vmov 0.0   ;;  %s1352_s15 = smov 64  }
  0x1c   : > { %s1586_s9 = smov (!%p373_p6, %s1410_s9), 1  ;;  %1085 = vmatpush.msk.msra.mxu0 %vm397_vm0, %v388_v2  ;;  %552 = vmatpush.msra.mxu3 %v424_v0  ;;  %v421_v5 = vld [vmem:[#allocation4] sm:$0xff]  ;;  %s1353_s16 = smov 32   ;;  %vm476_vm2 = vcmask 253952   ;;  %vm425_vm3 = vcmask 261120   ;;  %vm593_vm4 = vcmask 256002  }
  0x1d   : > { %s1083_s30 = sshll.u32 %s1586_s9, 3  ;;  %442 = vmatpush.msra.mxu1 %v423_v1  ;;  %493 = vmatpush.msra.mxu2 %v423_v1  ;;  %v1153_v7 = vld [vmem:[#allocation6] ss:$0 sm:$0xff]  ;;  %s379_s22 = scalar_lea.vmem %s1580_s6, %s1586_s9  ;;  %vm773_vm5 = vcmask 259077   ;;  %vm653_vm6 = vcmask 257027   ;;  %vm533_vm7 = vcmask 254977  }
  0x1e   : > { %s376_s14 = scalar_lea.vmem %s1574_s0, %s1083_s30  ;;  %612 = vmatpush.msrb.mxu0 %v424_v0  ;;  %553 = vmatpush.msra.mxu3 %v423_v1  ;;  %s1480_s19 = scalar_lea.vmem %s1581_s7, %s1083_s30  ;;  %vm713_vm8 = vcmask 258052   ;;  %vm893_vm9 = vcmask 261127   ;;  %vm940_vm10 = vcmask 122880   ;;  %vm833_vm11 = vcmask 260102  }
  0x1f   : > { %v387_v3 = vld [vmem:[%s376_s14] sm:$0xff]  ;;  %443 = vmatpush.msra.mxu1 %v422_v4  ;;  %494 = vmatpush.msra.mxu2 %v422_v4  ;;  %s1354_s23 = smov 16   ;;  %s1355_s26 = smov 112  }
  0x20   : > { %1086 = vmatmul.msk.f32.vlgmr.msra.gmra.mxu0 %vm393_vm1, %v387_v3  ;;  %554 = vmatpush.msra.mxu3 %v422_v4  ;;  %s386_s11 = scalar_lea.vmem %s1582_s8, %s1586_s9 }
  0x21   : > { %613 = vmatpush.msrb.mxu0 %v423_v1  ;;  %444 = vmatpush.msra.mxu1 %v421_v5 }
  0x22   : > { %445 = vmatmul.f32.vlgmr.msra.gmra.mxu1 %v1351_v6  ;;  %495 = vmatpush.msra.mxu2 %v421_v5 }
  0x23   : > { %555 = vmatpush.msra.mxu3 %v421_v5  ;;  %614 = vmatpush.msrb.mxu0 %v422_v4 }
  0x24   : > { %672 = vmatpush.msrb.mxu1 %v424_v0  ;;  %732 = vmatpush.msrb.mxu2 %v424_v0 }
  0x25   : > { %615 = vmatpush.msrb.mxu0 %v421_v5  ;;  %792 = vmatpush.msrb.mxu3 %v424_v0 }
  0x26   : > { %673 = vmatpush.msrb.mxu1 %v423_v1  ;;  %733 = vmatpush.msrb.mxu2 %v423_v1 }
  0x27   : > { %793 = vmatpush.msrb.mxu3 %v423_v1  ;;  %852 = vmatpush.msra.mxu0 %v424_v0 }
  0x28   : > { %674 = vmatpush.msrb.mxu1 %v422_v4  ;;  %734 = vmatpush.msrb.mxu2 %v422_v4 }
  0x29   : > { %794 = vmatpush.msrb.mxu3 %v422_v4  ;;  %853 = vmatpush.msra.mxu0 %v423_v1 }
  0x2a   : > { %675 = vmatpush.msrb.mxu1 %v421_v5  ;;  %735 = vmatpush.msrb.mxu2 %v421_v5 }
  0x2b   : > { %795 = vmatpush.msrb.mxu3 %v421_v5  ;;  %854 = vmatpush.msra.mxu0 %v422_v4 }
  0x2d   : > { %855 = vmatpush.msra.mxu0 %v421_v5 }
  0x9d   : > { %v418_v8 = vpop.f32.mrf.mxu0 }
  0x9e   : > { %v1468_v9 = vadd.f32 %v1153_v7, %v418_v8 }
  0x9f   : > { %v446_v10 = vpop.f32.mrf.mxu1 }
  0xa0   : > { %v449_v11 = vadd.f32 %v446_v10, %v1468_v9 }
  0xa2   : > { %1155 = vtanh.f32 %v449_v11  ;;  %v450_v13 = vmul.f32 0.5, %v449_v11 }
  0xa4   : > { %1157 = vtanh.f32 %v450_v13 }
  0xa8   : > { %v1156_v12 = vpop.eup %1155 }
  0xa9   : > { %457 = vrot.lane.b32.xlu0 %v1156_v12, %s1352_s15 }
  0xaa   : > { %v1158_v14 = vpop.eup %1157 }
  0xab   : > { %v452_v15 = vadd.f32 1.0, %v1158_v14 }
  0xad   : > { %v453_v16 = vmul.f32 0.5, %v452_v15 }
  0xaf   : > { %v455_v19 = vmul.f32 0.0, %v453_v16 }
 0x11b   : > { %v458_v17 = vpop.permute.xlu0 %457 }
 0x11c   : > { %v460_v18 = vmul.f32 %v458_v17, %v453_v16 }
 0x11e   : > { %462 = vrot.lane.b32.xlu0 %v460_v18, %s1353_s16 }
 0x190   : > { %v463_v20 = vpop.permute.xlu0 %462 }
 0x191   : > { %v465_v21 = vadd.f32 %v463_v20, %v455_v19 }
 0x193   : > { %1159 = vtanh.f32 %v465_v21  ;;  %v510_v36 = vrot.slane %v465_v21, 7 }
 0x199   : > { %v1160_v22 = vpop.eup %1159 }
 0x19a   : > { %468 = vrot.lane.b32.xlu1 %v1160_v22, %s1352_s15 }
 0x20c   : > { %v469_v23 = vpop.permute.xlu1 %468 }
 0x20d   : > { %v471_v24 = vmul.f32 %v469_v23, %v453_v16 }
 0x20f   : > { %473 = vrot.lane.b32.xlu1 %v471_v24, %s1353_s16 }
 0x281   : > { %v474_v25 = vpop.permute.xlu1 %473 }
 0x282   : > { %477 = vst.msk [vmem:[%s1480_s19] sm:$0x1] %vm476_vm2, %v474_v25  ;;  %1087 = vmatmul.msk.f32.vlgmr.msra.gmra.mxu2 %vm425_vm3, %v474_v25 }
 0x305   : > { %v497_v26 = vpop.f32.mrf.mxu2 }
 0x306   : > { %v501_v27 = vrot.slane %v497_v26, 7 }
 0x308   : > { %v503_v28 = vadd.f32 %v501_v27, %v1468_v9 }
 0x30a   : > { %1161 = vtanh.f32 %v503_v28  ;;  %v504_v30 = vmul.f32 0.5, %v503_v28 }
 0x30c   : > { %1163 = vtanh.f32 %v504_v30 }
 0x310   : > { %v1162_v29 = vpop.eup %1161 }
 0x311   : > { %514 = vrot.lane.b32.xlu2 %v1162_v29, %s1352_s15 }
 0x312   : > { %v1164_v31 = vpop.eup %1163 }
 0x313   : > { %v506_v32 = vadd.f32 1.0, %v1164_v31 }
 0x315   : > { %v507_v33 = vmul.f32 0.5, %v506_v32 }
 0x317   : > { %v512_v37 = vmul.f32 %v510_v36, %v507_v33 }
 0x36b   : > { %v515_v34 = vpop.permute.xlu2 %514 }
 0x36c   : > { %v517_v35 = vmul.f32 %v515_v34, %v507_v33 }
 0x36e   : > { %519 = vrot.lane.b32.xlu2 %v517_v35, %s1353_s16 }
 0x3c8   : > { %v520_v38 = vpop.permute.xlu2 %519 }
 0x3c9   : > { %v522_v39 = vadd.f32 %v520_v38, %v512_v37 }
 0x3cb   : > { %1165 = vtanh.f32 %v522_v39  ;;  %v570_v55 = vrot.slane %v522_v39, 7 }
 0x3d1   : > { %v1166_v40 = vpop.eup %1165 }
 0x3d2   : > { %525 = vrot.lane.b32.xlu0 %v1166_v40, %s1352_s15 }
 0x444   : > { %v526_v41 = vpop.permute.xlu0 %525 }
 0x445   : > { %v1488_v42 = vmul.f32 %v526_v41, %v507_v33 }
 0x447   : > { %v535_v43 = vrot.slane %v1488_v42, 1 }
 0x449   : > { %536 = vrot.lane.b32.xlu1 %v535_v43, %s1353_s16 }
 0x4bb   : > { %v537_v44 = vpop.permute.xlu1 %536 }
 0x4bc   : > { %1088 = vmatmul.msk.f32.vlgmr.msra.gmra.mxu3 %vm425_vm3, %v537_v44 }
 0x53f   : > { %v557_v45 = vpop.f32.mrf.mxu3 }
 0x540   : > { %v561_v46 = vrot.slane %v557_v45, 6 }
 0x542   : > { %v563_v47 = vadd.f32 %v561_v46, %v1468_v9 }
 0x544   : > { %1167 = vtanh.f32 %v563_v47  ;;  %v564_v49 = vmul.f32 0.5, %v563_v47 }
 0x546   : > { %1169 = vtanh.f32 %v564_v49 }
 0x54a   : > { %v1168_v48 = vpop.eup %1167 }
 0x54b   : > { %574 = vrot.lane.b32.xlu2 %v1168_v48, %s1352_s15 }
 0x54c   : > { %v1170_v50 = vpop.eup %1169 }
 0x54d   : > { %v566_v51 = vadd.f32 1.0, %v1170_v50 }
 0x54f   : > { %v567_v52 = vmul.f32 0.5, %v566_v51 }
 0x551   : > { %v572_v56 = vmul.f32 %v570_v55, %v567_v52 }
 0x5a5   : > { %v575_v53 = vpop.permute.xlu2 %574 }
 0x5a6   : > { %v577_v54 = vmul.f32 %v575_v53, %v567_v52 }
 0x5a8   : > { %579 = vrot.lane.b32.xlu0 %v577_v54, %s1353_s16 }
 0x61a   : > { %v580_v57 = vpop.permute.xlu0 %579 }
 0x61b   : > { %v582_v58 = vadd.f32 %v580_v57, %v572_v56 }
 0x61d   : > { %1171 = vtanh.f32 %v582_v58  ;;  %v630_v11 = vrot.slane %v582_v58, 7 }
 0x623   : > { %v1172_v59 = vpop.eup %1171 }
 0x624   : > { %585 = vrot.lane.b32.xlu1 %v1172_v59, %s1352_s15 }
 0x696   : > { %v586_v60 = vpop.permute.xlu1 %585 }
 0x697   : > { %v1497_v61 = vmul.f32 %v586_v60, %v567_v52 }
 0x699   : > { %v595_v62 = vrot.slane %v1497_v61, 2 }
 0x69b   : > { %596 = vrot.lane.b32.xlu2 %v595_v62, %s1353_s16 }
 0x6f5   : > { %v597_v63 = vpop.permute.xlu2 %596 }
 0x6f6   : > { %1089 = vmatmul.msk.f32.vlgmr.msrb.gmra.mxu0 %vm425_vm3, %v597_v63 }
 0x773   : > { %v617_v0 = vpop.f32.mrf.mxu0 }
 0x774   : > { %v621_v1 = vrot.slane %v617_v0, 5 }
 0x776   : > { %v623_v2 = vadd.f32 %v621_v1, %v1468_v9 }
 0x778   : > { %1173 = vtanh.f32 %v623_v2  ;;  %v624_v4 = vmul.f32 0.5, %v623_v2 }
 0x77a   : > { %1175 = vtanh.f32 %v624_v4 }
 0x77e   : > { %v1174_v3 = vpop.eup %1173 }
 0x77f   : > { %634 = vrot.lane.b32.xlu0 %v1174_v3, %s1352_s15 }
 0x780   : > { %v1176_v5 = vpop.eup %1175 }
 0x781   : > { %v626_v6 = vadd.f32 1.0, %v1176_v5 }
 0x783   : > { %v627_v7 = vmul.f32 0.5, %v626_v6 }
 0x785   : > { %v632_v12 = vmul.f32 %v630_v11, %v627_v7 }
 0x7f1   : > { %v635_v8 = vpop.permute.xlu0 %634 }
 0x7f2   : > { %v637_v10 = vmul.f32 %v635_v8, %v627_v7 }
 0x7f4   : > { %639 = vrot.lane.b32.xlu1 %v637_v10, %s1353_s16 }
 0x866   : > { %v640_v13 = vpop.permute.xlu1 %639 }
 0x867   : > { %v642_v14 = vadd.f32 %v640_v13, %v632_v12 }
 0x869   : > { %1177 = vtanh.f32 %v642_v14  ;;  %v690_v30 = vrot.slane %v642_v14, 7 }
 0x86f   : > { %v1178_v15 = vpop.eup %1177 }
 0x870   : > { %645 = vrot.lane.b32.xlu2 %v1178_v15, %s1352_s15 }
 0x8ca   : > { %v646_v16 = vpop.permute.xlu2 %645 }
 0x8cb   : > { %v1506_v17 = vmul.f32 %v646_v16, %v627_v7 }
 0x8cd   : > { %v655_v18 = vrot.slane %v1506_v17, 3 }
 0x8cf   : > { %656 = vrot.lane.b32.xlu0 %v655_v18, %s1353_s16 }
 0x941   : > { %v657_v19 = vpop.permute.xlu0 %656 }
 0x942   : > { %1090 = vmatmul.msk.f32.vlgmr.msrb.gmra.mxu1 %vm425_vm3, %v657_v19 }
 0x9bf   : > { %v677_v20 = vpop.f32.mrf.mxu1 }
 0x9c0   : > { %v681_v21 = vrot.slane %v677_v20, 4 }
 0x9c2   : > { %v683_v22 = vadd.f32 %v681_v21, %v1468_v9 }
 0x9c4   : > { %1179 = vtanh.f32 %v683_v22  ;;  %v684_v24 = vmul.f32 0.5, %v683_v22 }
 0x9c6   : > { %1181 = vtanh.f32 %v684_v24 }
 0x9ca   : > { %v1180_v23 = vpop.eup %1179 }
 0x9cb   : > { %694 = vrot.lane.b32.xlu1 %v1180_v23, %s1352_s15 }
 0x9cc   : > { %v1182_v25 = vpop.eup %1181 }
 0x9cd   : > { %v686_v26 = vadd.f32 1.0, %v1182_v25 }
 0x9cf   : > { %v687_v27 = vmul.f32 0.5, %v686_v26 }
 0x9d1   : > { %v692_v31 = vmul.f32 %v690_v30, %v687_v27 }
 0xa3d   : > { %v695_v28 = vpop.permute.xlu1 %694 }
 0xa3e   : > { %v697_v29 = vmul.f32 %v695_v28, %v687_v27 }
 0xa40   : > { %699 = vrot.lane.b32.xlu2 %v697_v29, %s1353_s16 }
 0xa9a   : > { %v700_v32 = vpop.permute.xlu2 %699 }
 0xa9b   : > { %v702_v33 = vadd.f32 %v700_v32, %v692_v31 }
 0xa9d   : > { %1183 = vtanh.f32 %v702_v33  ;;  %v750_v50 = vrot.slane %v702_v33, 7 }
 0xaa3   : > { %v1184_v34 = vpop.eup %1183 }
 0xaa4   : > { %705 = vrot.lane.b32.xlu0 %v1184_v34, %s1352_s15  ;;  %v898_v34 = vld [vmem:[#allocation7 + $0x18] sm:$0xff] }
 0xaa5   : > { %917 = vmatpush.msra.mxu1 %v898_v34 }
 0xb16   : > { %v706_v35 = vpop.permute.xlu0 %705 }
 0xb17   : > { %v1515_v36 = vmul.f32 %v706_v35, %v687_v27  ;;  %v1154_v27 = vld [vmem:[%s379_s22] ss:$0 sm:$0xff]  ;;  %v897_v35 = vld [vmem:[#allocation7 + $0x10] sm:$0xff] }
 0xb18   : > { %918 = vmatpush.msra.mxu1 %v897_v35 }
 0xb19   : > { %v715_v37 = vrot.slane %v1515_v36, 4 }
 0xb1b   : > { %716 = vrot.lane.b32.xlu1 %v715_v37, %s1353_s16  ;;  %v896_v37 = vld [vmem:[#allocation7 + $0x8] sm:$0xff] }
 0xb1c   : > { %919 = vmatpush.msra.mxu1 %v896_v37 }
 0xb8d   : > { %v717_v38 = vpop.permute.xlu1 %716 }
 0xb8e   : > { %1091 = vmatmul.msk.f32.vlgmr.msrb.gmra.mxu2 %vm425_vm3, %v717_v38 }
 0xc11   : > { %v737_v39 = vpop.f32.mrf.mxu2 }
 0xc12   : > { %v741_v40 = vrot.slane %v737_v39, 3 }
 0xc14   : > { %v743_v41 = vadd.f32 %v741_v40, %v1468_v9  ;;  %v895_v40 = vld [vmem:[#allocation7] sm:$0xff] }
 0xc15   : > { %920 = vmatpush.msra.mxu1 %v895_v40 }
 0xc16   : > { %1185 = vtanh.f32 %v743_v41  ;;  %v744_v44 = vmul.f32 0.5, %v743_v41 }
 0xc18   : > { %1187 = vtanh.f32 %v744_v44 }
 0xc1c   : > { %v1186_v43 = vpop.eup %1185 }
 0xc1d   : > { %754 = vrot.lane.b32.xlu2 %v1186_v43, %s1352_s15 }
 0xc1e   : > { %v1188_v45 = vpop.eup %1187 }
 0xc1f   : > { %v746_v46 = vadd.f32 1.0, %v1188_v45 }
 0xc21   : > { %v747_v47 = vmul.f32 0.5, %v746_v46 }
 0xc23   : > { %v752_v51 = vmul.f32 %v750_v50, %v747_v47 }
 0xc77   : > { %v755_v48 = vpop.permute.xlu2 %754 }
 0xc78   : > { %v757_v49 = vmul.f32 %v755_v48, %v747_v47 }
 0xc7a   : > { %759 = vrot.lane.b32.xlu0 %v757_v49, %s1353_s16 }
 0xcec   : > { %v760_v52 = vpop.permute.xlu0 %759 }
 0xced   : > { %v762_v53 = vadd.f32 %v760_v52, %v752_v51 }
 0xcef   : > { %1189 = vtanh.f32 %v762_v53  ;;  %v810_v6 = vrot.slane %v762_v53, 7 }
 0xcf5   : > { %v1190_v54 = vpop.eup %1189 }
 0xcf6   : > { %765 = vrot.lane.b32.xlu1 %v1190_v54, %s1352_s15 }
 0xd68   : > { %v766_v55 = vpop.permute.xlu1 %765 }
 0xd69   : > { %v768_v56 = vmul.f32 %v766_v55, %v747_v47 }
 0xd6b   : > { %v775_v57 = vrot.slane %v768_v56, 5 }
 0xd6d   : > { %776 = vrot.lane.b32.xlu2 %v775_v57, %s1353_s16 }
 0xdc7   : > { %v777_v58 = vpop.permute.xlu2 %776 }
 0xdc8   : > { %1092 = vmatmul.msk.f32.vlgmr.msrb.gmra.mxu3 %vm425_vm3, %v777_v58 }
 0xe4b   : > { %v797_v59 = vpop.f32.mrf.mxu3 }
 0xe4c   : > { %v801_v60 = vrot.slane %v797_v59, 2 }
 0xe4e   : > { %v803_v62 = vadd.f32 %v801_v60, %v1468_v9 }
 0xe50   : > { %1191 = vtanh.f32 %v803_v62  ;;  %v804_v0 = vmul.f32 0.5, %v803_v62 }
 0xe52   : > { %1193 = vtanh.f32 %v804_v0 }
 0xe56   : > { %v1192_v63 = vpop.eup %1191 }
 0xe57   : > { %814 = vrot.lane.b32.xlu0 %v1192_v63, %s1352_s15 }
 0xe58   : > { %v1194_v1 = vpop.eup %1193 }
 0xe59   : > { %v806_v2 = vadd.f32 1.0, %v1194_v1 }
 0xe5b   : > { %v807_v3 = vmul.f32 0.5, %v806_v2 }
 0xe5d   : > { %v812_v7 = vmul.f32 %v810_v6, %v807_v3 }
 0xec9   : > { %v815_v4 = vpop.permute.xlu0 %814 }
 0xeca   : > { %v817_v5 = vmul.f32 %v815_v4, %v807_v3 }
 0xecc   : > { %819 = vrot.lane.b32.xlu1 %v817_v5, %s1353_s16 }
 0xf3e   : > { %v820_v8 = vpop.permute.xlu1 %819 }
 0xf3f   : > { %v822_v10 = vadd.f32 %v820_v8, %v812_v7 }
 0xf41   : > { %1195 = vtanh.f32 %v822_v10 }
 0xf47   : > { %v1196_v11 = vpop.eup %1195 }
 0xf48   : > { %825 = vrot.lane.b32.xlu2 %v1196_v11, %s1352_s15 }
 0xfa2   : > { %v826_v12 = vpop.permute.xlu2 %825 }
 0xfa3   : > { %v1530_v13 = vmul.f32 %v826_v12, %v807_v3 }
 0xfa5   : > { %v835_v14 = vrot.slane %v1530_v13, 6 }
 0xfa7   : > { %836 = vrot.lane.b32.xlu0 %v835_v14, %s1353_s16 }
0x1019   : > { %v837_v15 = vpop.permute.xlu0 %836 }
0x101a   : > { %1093 = vmatmul.msk.f32.vlgmr.msra.gmra.mxu0 %vm425_vm3, %v837_v15 }
0x1097   : > { %v857_v16 = vpop.f32.mrf.mxu0 }
0x1098   : > { %v861_v18 = vrot.slane %v857_v16, 1 }
0x109a   : > { %v863_v19 = vadd.f32 %v861_v18, %v1468_v9  ;;  %v870_v9 = vrot.slane %v822_v10, 7 }
0x109c   : > { %1197 = vtanh.f32 %v863_v19  ;;  %v864_v21 = vmul.f32 0.5, %v863_v19 }
0x109e   : > { %1199 = vtanh.f32 %v864_v21 }
0x10a2   : > { %v1198_v20 = vpop.eup %1197 }
0x10a3   : > { %874 = vrot.lane.b32.xlu1 %v1198_v20, %s1352_s15 }
0x10a4   : > { %v1200_v22 = vpop.eup %1199 }
0x10a5   : > { %v866_v23 = vadd.f32 1.0, %v1200_v22 }
0x10a7   : > { %v867_v24 = vmul.f32 0.5, %v866_v23 }
0x10a9   : > { %v872_v28 = vmul.f32 %v870_v9, %v867_v24 }
0x1115   : > { %v875_v25 = vpop.permute.xlu1 %874 }
0x1116   : > { %v877_v26 = vmul.f32 %v875_v25, %v867_v24 }
0x1118   : > { %879 = vrot.lane.b32.xlu2 %v877_v26, %s1353_s16 }
0x1120   : > { %931 = vrot.lane.b32.xlu2 %v1154_v27, %s1354_s23 }
0x1128   : > { %590 = vrot.lane.b32.xlu2 %v1497_v61, %s1353_s16 }
0x1130   : > { %770 = vrot.lane.b32.xlu2 %v768_v56, %s1353_s16 }
0x1172   : > { %v880_v29 = vpop.permute.xlu2 %879 }
0x1173   : > { %v882_v30 = vadd.f32 %v880_v29, %v872_v28 }
0x1175   : > { %1201 = vtanh.f32 %v882_v30 }
0x117a   : > { %v932_v31 = vpop.permute.xlu2 %931 }
0x117b   : > { %v1202_v32 = vpop.eup %1201 }
0x117c   : > { %885 = vrot.lane.b32.xlu0 %v1202_v32, %s1352_s15 }
0x1182   : > { %v591_v33 = vpop.permute.xlu2 %590 }
0x1183   : > { %594 = vst.msk [vmem:[%s1480_s19] sm:$0x4] %vm593_vm4, %v591_v33 }
0x1184   : > { %650 = vrot.lane.b32.xlu0 %v1506_v17, %s1353_s16 }
0x118a   : > { %v771_v61 = vpop.permute.xlu2 %770 }
0x118b   : > { %774 = vst.msk [vmem:[%s1480_s19] sm:$0x20] %vm773_vm5, %v771_v61 }
0x11ee   : > { %v886_v38 = vpop.permute.xlu0 %885 }
0x11ef   : > { %v888_v39 = vmul.f32 %v886_v38, %v867_v24 }
0x11f1   : > { %v900_v41 = vrot.slane %v888_v39, 7 }
0x11f3   : > { %901 = vrot.lane.b32.xlu1 %v900_v41, %s1353_s16 }
0x11f6   : > { %v651_v17 = vpop.permute.xlu0 %650 }
0x11f7   : > { %654 = vst.msk [vmem:[%s1480_s19] sm:$0x8] %vm653_vm6, %v651_v17 }
0x11fb   : > { %530 = vrot.lane.b32.xlu1 %v1488_v42, %s1353_s16  ;;  %v899_v42 = vld [vmem:[%s1579_s5] sm:$0x1] }
0x1203   : > { %710 = vrot.lane.b32.xlu1 %v1515_v36, %s1353_s16 }
0x120b   : > { %890 = vrot.lane.b32.xlu1 %v888_v39, %s1353_s16 }
0x1265   : > { %v902_v43 = vpop.permute.xlu1 %901 }
0x1266   : > { %1094 = vmatmul.msk.f32.vlgmr.msra.gmra.mxu1 %vm425_vm3, %v902_v43 }
0x126d   : > { %v531_v44 = vpop.permute.xlu1 %530 }
0x126e   : > { %534 = vst.msk [vmem:[%s1480_s19] sm:$0x2] %vm533_vm7, %v531_v44 }
0x1275   : > { %v711_v45 = vpop.permute.xlu1 %710 }
0x1276   : > { %714 = vst.msk [vmem:[%s1480_s19] sm:$0x10] %vm713_vm8, %v711_v45 }
0x127d   : > { %v891_v46 = vpop.permute.xlu1 %890 }
0x127e   : > { %894 = vst.msk [vmem:[%s1480_s19] sm:$0x80] %vm893_vm9, %v891_v46 }
0x12e3   : > { %v922_v36 = vpop.f32.mrf.mxu1 }
0x12e4   : > { %v923_v47 = vadd.f32 %v922_v36, %v899_v42 }
0x12e6   : > { %v925_v48 = vmul.f32 0.5, %v923_v47 }
0x12e8   : > { %v926_v49 = vmul.f32 1.442695, %v925_v48 }
0x12ea   : > { %1203 = vpow2.f32 %v926_v49 }
0x12f0   : > { %v1204_v50 = vpop.eup %1203 }
0x12f1   : > { %v934_v51 = vmul.f32 %v1204_v50, %v932_v31 }
0x12f3   : > { %936 = vrot.lane.b32.xlu0 %v934_v51, %s1355_s26 }
0x12fb   : > { %830 = vrot.lane.b32.xlu0 %v1530_v13, %s1353_s16 }
0x1365   : > { %v937_v52 = vpop.permute.xlu0 %936 }
0x1366   : > { %v939_v53 = vadd.f32 %v937_v52, %v923_v47 }
0x1368   : > { %941 = vst.msk [vmem:[%s386_s11] sm:$0x1] %vm940_vm10, %v939_v53 }
0x136d   : > { %v831_v54 = vpop.permute.xlu0 %830 }
0x136e   : > { %834 = vst.msk [vmem:[%s1480_s19] sm:$0x40] %vm833_vm11, %v831_v54 }
0x136f PF: > { %s22_s27 = sadd.s32 1, %s1343_s27  }
0x1370   : > { %p19_p7 = scmp.ge.s32.totalorder %s22_s27, 4  }
0x1372   :  { %21 = sbr.rel (!%p19_p7) target bundleno = 3 (0x3), region = 110 }
0x1377   :  { %973 = vsyncpa [#allocation3], 1 }
0x1378   :  { %975 = vsyncpa [#allocation3 + $0x1], 1 }
0x1379   :  { %976 = vsyncpa [#allocation5], 1 }
0x137a   :  { %977 = vsyncpa [#allocation8], 1 }

// kernel: smavra_forward.4
= control target key start
LH: loop header
LB: loop body
LE: loop exit
PB: predicated region body
PF: predicated region fallthrough
CT: control target
= control target key end

     0   :  { %13 = vsyncpa [#allocation3], 0  ;;  %s1266_s0 = inlined_call_operand.vmem [shape: f32[2,8,32], index: 0, kind: input, shape index: {}]   ;;  %s1267_s1 = inlined_call_operand.hbm [shape: f32[32,96], index: 1, kind: input, shape index: {}]   ;;  %s1268_s2 = inlined_call_operand.hbm [shape: f32[1,96], index: 2, kind: input, shape index: {}]   ;;  %s1269_s3 = inlined_call_operand.hbm [shape: f32[32,32], index: 3, kind: input, shape index: {}]   ;;  %s1270_s4 = inlined_call_operand.hbm [shape: f32[1,32], index: 4, kind: input, shape index: {}]   ;;  %s1271_s5 = inlined_call_operand.hbm [shape: f32[32,32], index: 5, kind: input, shape index: {}]   ;;  %s1272_s6 = inlined_call_operand.hbm [shape: f32[1,32], index: 6, kind: input, shape index: {}]   ;;  %s1273_s7 = inlined_call_operand.vmem [shape: f32[2,8,32], index: 7, kind: input, shape index: {}]   ;;  %s1274_s8 = inlined_call_operand.vmem [shape: f32[2,8,32], index: 8, kind: output, shape index: {}]  }
   0x1   :  { %14 = vsyncpa [#allocation5], 0 }
   0x2   :  { %15 = vsyncpa [#allocation8], 0 }
   0x3   :  { %16 = vsyncpa [#allocation11], 0  ;;  %s1161_s27 = smov 0  }
   0x4 LB: > { %s257_s30 = sshll.u32 %s1268_s2, 4  ;;  %s1170_s9 = sadd.s32 4294967295, %s1100_s27   ;;  %s1100_s27 = sphi %s1161_s27, %s22_s27   ;;  %s258_s30 = int_to_ptr.hbm [resolvable:$true] %s257_s30 }
   0x5   : > { %p779_p0 = scmp.ge.s32.totalorder %s1100_s27, 1  ;;  %p231_p1 = scmp.lt.s32.totalorder %s1100_s27, 3 }
   0x6   : > { %p851_p2 = scmp.eq.s32.totalorder %s1170_s9, 0  ;;  %s1102_s11 = smov [#allocation4]  }
   0x7   : > { %p1175_p3 = pnand %p779_p0, %p231_p1  ;;  %s259_s12 = sshll.u32 %s1102_s11, 4  ;;  %s260_s12 = int_to_ptr.vmem [resolvable:$true] %s259_s12 }
   0x8   : > { %s283_s15 = sshll.u32 %s1270_s4, 4  ;;  %s242_s18 = sshll.u32 %s1267_s1, 4  ;;  %s284_s15 = int_to_ptr.hbm [resolvable:$true] %s283_s15  ;;  %s243_s18 = int_to_ptr.hbm [resolvable:$true] %s242_s18 }
   0x9   : > { %p832_p4 = pneg %p1175_p3  ;;  %s1103_s20 = smov [#allocation7]  }
   0xa   : > { %s285_s21 = sshll.u32 %s1103_s20, 4  ;;  %s1104_s22 = smov [#allocation2]   ;;  %s286_s21 = int_to_ptr.vmem [resolvable:$true] %s285_s21 }
   0xb   : > { %p1189_p5 = pnand %p851_p2, %p832_p4  ;;  %s244_s23 = sshll.u32 %s1104_s22, 4  ;;  %s245_s23 = int_to_ptr.vmem [resolvable:$true] %s244_s23 }
   0xc   : > { %s1105_s24 = smov 128   ;;  %s1106_s25 = smov 8  }
   0xd   : > { %838 = dma.hbm_to_vmem [thread:$0]  (!%p1189_p5), %s258_s30, 16, %s260_s12, [#allocation5]  }
   0xe   : > { %844 = dma.hbm_to_vmem [thread:$0]  (!%p1189_p5), %s284_s15, 16, %s286_s21, [#allocation8]  }
   0xf   : > { %835 = dma.hbm_to_vmem [thread:$0]  (!%p1189_p5), %s243_s18, 512, %s245_s23, [#allocation3], %s1105_s24, %s1105_s24, %s1106_s25  }
  0x10   : > { %s268_s29 = sshll.u32 %s1269_s3, 4  ;;  %s1107_s11 = smov [#allocation6]   ;;  %s269_s29 = int_to_ptr.hbm [resolvable:$true] %s268_s29 }
  0x11   : > { %s270_s13 = sshll.u32 %s1107_s11, 4  ;;  %s294_s14 = sshll.u32 %s1271_s5, 4  ;;  %s271_s13 = int_to_ptr.vmem [resolvable:$true] %s270_s13  ;;  %s295_s14 = int_to_ptr.hbm [resolvable:$true] %s294_s14 }
  0x12   : > { %841 = dma.hbm_to_vmem [thread:$0]  (!%p1189_p5), %s269_s29, 512, %s271_s13, [#allocation5], %s1105_s24, %s1105_s24, %s1106_s25  }
  0x13   : > { %s1108_s15 = smov [#allocation9]   ;;  %s309_s20 = sshll.u32 %s1272_s6, 4  ;;  %s310_s20 = int_to_ptr.hbm [resolvable:$true] %s309_s20 }
  0x14   : > { %s296_s16 = sshll.u32 %s1108_s15, 4  ;;  %s1109_s21 = smov [#allocation10]   ;;  %s297_s16 = int_to_ptr.vmem [resolvable:$true] %s296_s16 }
  0x15   : > { %847 = dma.hbm_to_vmem [thread:$0]  (!%p1189_p5), %s295_s14, 512, %s297_s16, [#allocation8], %s1105_s24, %s1105_s24, %s1106_s25  }
  0x16   : > { %s311_s22 = sshll.u32 %s1109_s21, 4  ;;  %338 = sbr.rel (%p1175_p3) target bundleno = 1186 (0x4a2), region = 52  ;;  %s312_s22 = int_to_ptr.vmem [resolvable:$true] %s311_s22 }
  0x17   : > { %850 = dma.hbm_to_vmem [thread:$0]  (!%p1189_p5), %s310_s20, 16, %s312_s22, [#allocation11]  }
  0x1b   : > { %1083 = dma.done.wait (%p851_p2), [#allocation3], 512  }
  0x1c   : > { %1085 = vsyncadd (%p851_p2), [#allocation3], 4294966784 }
  0x1d   : > { %1087 = dma.done.wait (%p851_p2), [#allocation5], 528  }
  0x1e   : > { %1089 = vsyncadd (%p851_p2), [#allocation5], 4294966768 }
  0x1f   : > { %1091 = dma.done.wait (%p851_p2), [#allocation8], 528  }
  0x20   : > { %1093 = vsyncadd (%p851_p2), [#allocation8], 4294966768 }
  0x21   : > { %1095 = dma.done.wait (%p851_p2), [#allocation11], 16  }
  0x22   : > { %1097 = vsyncadd (%p851_p2), [#allocation11], 4294967280  ;;  %p400_p6 = scmp.lt.s32.totalorder %s1170_s9, 1  ;;  %v416_v0 = vld [vmem:[#allocation2 + $0x18] sm:$0xff]  ;;  %v415_v1 = vld [vmem:[#allocation2 + $0x10] sm:$0xff]  ;;  %vm421_vm0 = vcmask 261120  }
  0x23   : > { %437 = vmatpush.msra.mxu0 %v416_v0  ;;  %v414_v2 = vld [vmem:[#allocation2 + $0x8] sm:$0xff]  ;;  %v413_v3 = vld [vmem:[#allocation2] sm:$0xff]  ;;  %s1111_s25 = smov 96   ;;  %s1112_s26 = smov 80   ;;  %vm448_vm1 = vcmask 130048   ;;  %vm474_vm2 = vcmask 64512  }
  0x24   : > { %s1278_s9 = smov (!%p400_p6, %s1170_s9), 1  ;;  %v885_v5 = vld [vmem:[#allocation4] ss:$0 sm:$0xff]  ;;  %s1113_s28 = smov 64   ;;  %v585_v36 = vld [vmem:[#allocation6 + $0x10] sm:$0xff]  ;;  %v584_v37 = vld [vmem:[#allocation6 + $0x8] sm:$0xff] }
  0x25   : > { %s1234_s10 = sshll.u32 %s1278_s9, 3  ;;  %438 = vmatpush.msra.mxu0 %v415_v1  ;;  %s1110_s9 = smov 112   ;;  %v586_v35 = vld [vmem:[#allocation6 + $0x18] sm:$0xff]  ;;  %v583_v40 = vld [vmem:[#allocation6] sm:$0xff]  ;;  %v615_v45 = vld [vmem:[#allocation9 + $0x8] sm:$0xff] }
  0x26   : > { %s403_s24 = scalar_lea.vmem %s1266_s0, %s1234_s10  ;;  %s1114_s29 = smov 48   ;;  %v617_v41 = vld [vmem:[#allocation9 + $0x18] sm:$0xff]  ;;  %v616_v42 = vld [vmem:[#allocation9 + $0x10] sm:$0xff]  ;;  %v614_v46 = vld [vmem:[#allocation9] sm:$0xff] }
  0x27   : > { %439 = vmatpush.msra.mxu0 %v414_v2  ;;  %v412_v4 = vld [vmem:[%s403_s24] sm:$0xff]  ;;  %s1115_s11 = smov 16   ;;  %s407_s12 = scalar_lea.vmem %s1273_s7, %s1234_s10 }
  0x28   : > { %v886_v47 = vld [vmem:[#allocation7] ss:$0 sm:$0xff]  ;;  %v887_v50 = vld [vmem:[#allocation10] ss:$0 sm:$0xff]  ;;  %s411_s16 = scalar_lea.vmem %s1274_s8, %s1234_s10 }
  0x29   : > { %440 = vmatpush.msra.mxu0 %v413_v3  ;;  %v648_v55 = vld [vmem:[%s407_s12] sm:$0xff] }
  0x2a   : > { %797 = vmatmul.msk.f32.vlgmr.msra.gmra.mxu0 %vm421_vm0, %v412_v4 }
  0xa7   : > { %v442_v6 = vpop.f32.mrf.mxu0 }
  0xa8   : > { %v443_v7 = vadd.f32 %v885_v5, %v442_v6 }
  0xaa   : > { %512 = vrot.lane.b32.xlu1 %v443_v7, %s1110_s9  ;;  %446 = vrot.lane.b32.xlu0 %v443_v7, %s1111_s25 }
  0xb2   : > { %514 = vrot.lane.b32.xlu0 %v443_v7, %s1112_s26 }
 0x11c   : > { %v447_v8 = vpop.permute.xlu0 %446  ;;  %v513_v10 = vpop.permute.xlu1 %512 }
 0x11d   : > { %798 = vmatpush.xpose.msk.msra.mxu1 %vm448_vm1, %v447_v8 }
 0x120   : > { %799 = vmatmul.msk.f32.vlgmr.msra.gmra.mxu1 %vm448_vm1, %v443_v7 }
 0x121   : > { %606 = vmatpush.msrb.mxu1 %v586_v35 }
 0x123   : > { %607 = vmatpush.msrb.mxu1 %v585_v36 }
 0x124   : > { %v515_v9 = vpop.permute.xlu0 %514 }
 0x125   : > { %801 = vmatpush.xpose.msk.msra.mxu3 %vm448_vm1, %v515_v9  ;;  %608 = vmatpush.msrb.mxu1 %v584_v37 }
 0x127   : > { %609 = vmatpush.msrb.mxu1 %v583_v40 }
 0x128   : > { %802 = vmatmul.msk.f32.vlgmr.msra.gmra.mxu3 %vm448_vm1, %v513_v10 }
 0x129   : > { %637 = vmatpush.msrb.mxu3 %v617_v41 }
 0x12b   : > { %638 = vmatpush.msrb.mxu3 %v616_v42 }
 0x12d   : > { %639 = vmatpush.msrb.mxu3 %v615_v45 }
 0x12f   : > { %640 = vmatpush.msrb.mxu3 %v614_v46 }
 0x19d   : > { %v470_v11 = vpop.f32.mrf.mxu1 }
 0x19e   : > { %v473_v12 = vmul.f32 0.25, %v470_v11 }
 0x1a0   : > { %v475_v13 = vsel %vm474_vm2, %v473_v12, -inf }
 0x1a1   : > { %476 = vmax.xlane.f32.xlu1 %v475_v13 }
 0x1ab   : > { %v537_v14 = vpop.f32.mrf.mxu3 }
 0x1ac   : > { %v540_v15 = vmul.f32 0.25, %v537_v14 }
 0x1ae   : > { %v541_v16 = vsel %vm474_vm2, %v540_v15, -inf }
 0x1af   : > { %542 = vmax.xlane.f32.xlu2 %v541_v16 }
 0x214   : > { %v477_v17 = vpop.xlane.xlu1 %476 }
 0x215   : > { %v478_v18 = vsub.f32 %v473_v12, %v477_v17 }
 0x217   : > { %v479_v19 = vmul.f32 1.442695, %v478_v18 }
 0x219   : > { %888 = vpow2.f32 %v479_v19 }
 0x21f   : > { %v889_v20 = vpop.eup %888 }
 0x220   : > { %v481_v21 = vsel %vm474_vm2, %v889_v20, 0.0 }
 0x221   : > { %482 = vadd.xlane.f32.xlu2 %v481_v21 }
 0x222   : > { %v543_v22 = vpop.xlane.xlu2 %542 }
 0x223   : > { %v544_v23 = vsub.f32 %v540_v15, %v543_v22 }
 0x225   : > { %v545_v24 = vmul.f32 1.442695, %v544_v23 }
 0x227   : > { %890 = vpow2.f32 %v545_v24 }
 0x22d   : > { %v891_v25 = vpop.eup %890 }
 0x22e   : > { %v547_v26 = vsel %vm474_vm2, %v891_v25, 0.0 }
 0x22f   : > { %548 = vadd.xlane.f32.xlu0 %v547_v26 }
 0x239   : > { %486 = vrot.lane.b32.xlu2 %v443_v7, %s1113_s28 }
 0x241   : > { %552 = vrot.lane.b32.xlu2 %v443_v7, %s1114_s29 }
 0x294   : > { %v483_v27 = vpop.xlane.xlu2 %482 }
 0x295   : > { %892 = vrcp.f32 %v483_v27 }
 0x29b   : > { %v893_v28 = vpop.eup %892 }
 0x29c   : > { %v487_v29 = vpop.permute.xlu2 %486  ;;  %v485_v30 = vmul.f32 %v893_v28, %v889_v20 }
 0x29d   : > { %507 = vmatpush.msra.mxu2 %v487_v29 }
 0x29e   : > { %800 = vmatmul.msk.f32.vlgmr.msra.gmra.mxu2 %vm474_vm2, %v485_v30 }
 0x2a2   : > { %v549_v31 = vpop.xlane.xlu0 %548 }
 0x2a3   : > { %894 = vrcp.f32 %v549_v31 }
 0x2a4   : > { %v553_v32 = vpop.permute.xlu2 %552 }
 0x2a5   : > { %573 = vmatpush.msrb.mxu2 %v553_v32 }
 0x2a9   : > { %v895_v33 = vpop.eup %894 }
 0x2aa   : > { %v551_v34 = vmul.f32 %v895_v33, %v891_v25 }
 0x2ac   : > { %803 = vmatmul.msk.f32.vlgmr.msrb.gmra.mxu2 %vm474_vm2, %v551_v34 }
 0x321   : > { %v509_v38 = vpop.f32.mrf.mxu2 }
 0x32f   : > { %v575_v39 = vpop.f32.mrf.mxu2 }
 0x330   : > { %579 = vrot.lane.b32.xlu2 %v575_v39, %s1115_s11 }
 0x38a   : > { %v580_v43 = vpop.permute.xlu2 %579 }
 0x38b   : > { %v582_v44 = vsel %vm448_vm1, %v509_v38, %v580_v43 }
 0x38c   : > { %804 = vmatmul.msk.f32.vlgmr.msrb.gmra.mxu1 %vm421_vm0, %v582_v44 }
 0x409   : > { %v611_v48 = vpop.f32.mrf.mxu1 }
 0x40a   : > { %v612_v49 = vadd.f32 %v886_v47, %v611_v48 }
 0x40c   : > { %805 = vmatmul.msk.f32.vlgmr.msrb.gmra.mxu3 %vm421_vm0, %v612_v49 }
 0x48f   : > { %v642_v51 = vpop.f32.mrf.mxu3 }
 0x490   : > { %v643_v52 = vadd.f32 %v887_v50, %v642_v51 }
 0x492   : > { %v645_v53 = vmul.f32 0.5, %v643_v52 }
 0x494   : > { %v646_v54 = vmul.f32 1.442695, %v645_v53 }
 0x496   : > { %896 = vpow2.f32 %v646_v54 }
 0x49c   : > { %v897_v56 = vpop.eup %896 }
 0x49d   : > { %v649_v57 = vmul.f32 %v897_v56, %v648_v55 }
 0x49f   : > { %v650_v58 = vadd.f32 %v649_v57, %v612_v49 }
 0x4a1   : > { %651 = vst.msk [vmem:[%s411_s16] sm:$0xff] %vm421_vm0, %v650_v58 }
 0x4a2 PF: > { %s22_s27 = sadd.s32 1, %s1100_s27  }
 0x4a3   : > { %p19_p7 = scmp.ge.s32.totalorder %s22_s27, 4  }
 0x4a5   :  { %21 = sbr.rel (!%p19_p7) target bundleno = 4 (0x4), region = 110 }
 0x4aa   :  { %671 = vsyncpa [#allocation3], 1 }
 0x4ab   :  { %673 = vsyncpa [#allocation3 + $0x1], 1 }
 0x4ac   :  { %674 = vsyncpa [#allocation5], 1 }
 0x4ad   :  { %675 = vsyncpa [#allocation8], 1 }
 0x4ae   :  { %676 = vsyncpa [#allocation11], 1 }

// kernel: smavra_forward.5
= control target key start
LH: loop header
LB: loop body
LE: loop exit
PB: predicated region body
PF: predicated region fallthrough
CT: control target
= control target key end

     0   :  { %s996_s21 = smov 0   ;;  %s1147_s0 = inlined_call_operand.vmem [shape: f32[2,8,32], index: 0, kind: input, shape index: {}]   ;;  %s1148_s1 = inlined_call_operand.vmem [shape: f32[2,1,16], index: 1, kind: input, shape index: {}]   ;;  %s1149_s2 = inlined_call_operand.vmem [shape: f32[32,16], index: 2, kind: input, shape index: {}]   ;;  %s1150_s3 = inlined_call_operand.vmem [shape: f32[16,16], index: 3, kind: input, shape index: {}]   ;;  %s1151_s4 = inlined_call_operand.vmem [shape: f32[4,16], index: 4, kind: input, shape index: {}]   ;;  %s1152_s5 = inlined_call_operand.vmem [shape: f32[1,16], index: 5, kind: input, shape index: {}]   ;;  %s1153_s6 = inlined_call_operand.vmem [shape: f32[2,8,4], index: 6, kind: output, shape index: {}]  }
   0x1 LB: > { %s860_s22 = sadd.s32 4294967295, %s954_s21   ;;  %p864_p0 = scmp.ge.s32.totalorder %s954_s21, 1  ;;  %s954_s21 = sphi %s996_s21, %s16_s21  }
   0x2   : > { %p219_p1 = scmp.lt.s32.totalorder %s954_s21, 3 }
   0x4   : > { %p220_p2 = pnand %p864_p0, %p219_p1 }
   0x5   : > { %p250_p3 = scmp.lt.s32.totalorder (!%p220_p2), %s860_s22, 1  ;;  %s957_s24 = smov (!%p220_p2), 120  }
   0x6   : > { %223 = sbr.rel (%p220_p2) target bundleno = 4704 (0x1260), region = 44  ;;  %s958_s25 = smov (!%p220_p2), 4  }
   0x7   : > { %s959_s26 = smov (!%p220_p2), 8   ;;  %s960_s27 = smov (!%p220_p2), 116  }
   0xb   : > { %v265_v0 = vld [vmem:[%s1149_s2 + $0x18] sm:$0xff]  ;;  %v264_v1 = vld [vmem:[%s1149_s2 + $0x10] sm:$0xff]  ;;  %vm328_vm0 = vcmask 1043456   ;;  %v296_v2 = vld [vmem:[%s1150_s3 + $0x8] sm:$0xff]  ;;  %s1155_s22 = smov (!%p250_p3, %s860_s22), 1  ;;  %v956_v6 = vmov 0.0  }
   0xc   : > { %286 = vmatpush.msra.mxu0 %v265_v0  ;;  %v1016_v3 = vld [vmem:[%s1151_s4] sm:$0xf]  ;;  %v263_v4 = vld [vmem:[%s1149_s2 + $0x8] sm:$0xff]  ;;  %315 = vmatpush.msra.mxu1 %v296_v2  ;;  %vm297_vm1 = vcmask 130048   ;;  %s865_s13 = sshll.u32 %s1155_s22, 3  ;;  %s256_s16 = scalar_lea.vmem %s1148_s1, %s1155_s22  ;;  %vm270_vm2 = vcmask 261120  }
   0xd   : > { %869 = vmatpush.msk.msra.mxu2 %vm328_vm0, %v1016_v3  ;;  %v295_v5 = vld [vmem:[%s1150_s3] sm:$0xff]  ;;  %870 = vmatpush.msk.msra.mxu3 %vm328_vm0, %v1016_v3  ;;  %s253_s19 = scalar_lea.vmem %s1147_s0, %s865_s13  ;;  %s1068_s30 = scalar_lea.vmem %s1153_s6, %s865_s13  ;;  %vm379_vm3 = vcmask 24576   ;;  %vm324_vm4 = vcmask 31744   ;;  %vm436_vm5 = vcmask 25601   ;;  %vm616_vm6 = vcmask 28676  }
   0xe   : > { %287 = vmatpush.msra.mxu0 %v264_v1  ;;  %348 = vmatmul.f32.vlgmr.msra.gmra.mxu2 %v956_v6  ;;  %v262_v7 = vld [vmem:[%s1149_s2] sm:$0xff]  ;;  %vm496_vm7 = vcmask 26626   ;;  %vm676_vm8 = vcmask 29701   ;;  %vm556_vm9 = vcmask 27651   ;;  %vm736_vm10 = vcmask 30726  }
   0xf   : > { %316 = vmatpush.msra.mxu1 %v295_v5  ;;  %v294_v8 = vld [vmem:[%s256_s16] sm:$0x1]  ;;  %872 = vmatpush.msk.msrb.mxu2 %vm328_vm0, %v1016_v3  ;;  %vm796_vm11 = vcmask 31751  }
  0x10   : > { %288 = vmatpush.msra.mxu0 %v263_v4  ;;  %v261_v9 = vld [vmem:[%s253_s19] sm:$0xff]  ;;  %868 = vmatmul.msk.f32.vlgmr.msra.gmra.mxu1 %vm297_vm1, %v294_v8 }
  0x11   : > { %874 = vmatpush.msk.msrb.mxu3 %vm328_vm0, %v1016_v3  ;;  %876 = vmatpush.msk.msrb.mxu1 %vm328_vm0, %v1016_v3  ;;  %v899_v10 = vld [vmem:[%s1152_s5] ss:$0 sm:$0xff] }
  0x12   : > { %289 = vmatpush.msra.mxu0 %v262_v7  ;;  %880 = vmatpush.msk.msra.mxu2 %vm328_vm0, %v1016_v3 }
  0x13   : > { %867 = vmatmul.msk.f32.vlgmr.msra.gmra.mxu0 %vm270_vm2, %v261_v9 }
  0x14   : > { %878 = vmatpush.msk.msrb.mxu0 %vm328_vm0, %v1016_v3 }
  0x8d   : > { %v318_v11 = vpop.f32.mrf.mxu1 }
  0x8e   : > { %v321_v12 = vperm.slane %v318_v11, 0 }
  0x90   : > { %v291_v13 = vpop.f32.mrf.mxu0 }
  0x91   : > { %v292_v14 = vadd.f32 %v899_v10, %v291_v13  ;;  %v349_v15 = vpop.f32.mrf.mxu2 }
  0x93   : > { %v1056_v16 = vadd.f32 %v321_v12, %v292_v14 }
  0x95   : > { %v352_v17 = vadd.f32 %v349_v15, %v1056_v16 }
  0x97   : > { %900 = vtanh.f32 %v352_v17  ;;  %v353_v19 = vmul.f32 0.5, %v352_v17 }
  0x99   : > { %902 = vtanh.f32 %v353_v19 }
  0x9d   : > { %v901_v18 = vpop.eup %900 }
  0x9e   : > { %360 = vrot.lane.b32.xlu0 %v901_v18, %s957_s24 }
  0x9f   : > { %v903_v20 = vpop.eup %902 }
  0xa0   : > { %v355_v21 = vadd.f32 1.0, %v903_v20 }
  0xa2   : > { %v356_v22 = vmul.f32 0.5, %v355_v21 }
  0xa4   : > { %v358_v25 = vmul.f32 0.0, %v356_v22 }
 0x110   : > { %v361_v23 = vpop.permute.xlu0 %360 }
 0x111   : > { %v363_v24 = vmul.f32 %v361_v23, %v356_v22 }
 0x113   : > { %365 = vrot.lane.b32.xlu0 %v363_v24, %s958_s25 }
 0x185   : > { %v366_v26 = vpop.permute.xlu0 %365 }
 0x186   : > { %v368_v27 = vadd.f32 %v366_v26, %v358_v25 }
 0x188   : > { %904 = vtanh.f32 %v368_v27  ;;  %v413_v42 = vrot.slane %v368_v27, 7 }
 0x18e   : > { %v905_v28 = vpop.eup %904 }
 0x18f   : > { %371 = vrot.lane.b32.xlu1 %v905_v28, %s959_s26 }
 0x201   : > { %v372_v29 = vpop.permute.xlu1 %371 }
 0x202   : > { %v374_v30 = vmul.f32 %v372_v29, %v356_v22 }
 0x204   : > { %376 = vrot.lane.b32.xlu1 %v374_v30, %s960_s27 }
 0x276   : > { %v377_v31 = vpop.permute.xlu1 %376 }
 0x277   : > { %380 = vst.msk [vmem:[%s1068_s30] sm:$0x1] %vm379_vm3, %v377_v31  ;;  %871 = vmatmul.msk.f32.vlgmr.msra.gmra.mxu3 %vm324_vm4, %v377_v31 }
 0x278   : > { %882 = vmatpush.msk.msra.mxu3 %vm328_vm0, %v1016_v3 }
 0x2fa   : > { %v400_v32 = vpop.f32.mrf.mxu3 }
 0x2fb   : > { %v404_v33 = vrot.slane %v400_v32, 7 }
 0x2fd   : > { %v406_v34 = vadd.f32 %v404_v33, %v1056_v16 }
 0x2ff   : > { %906 = vtanh.f32 %v406_v34  ;;  %v407_v36 = vmul.f32 0.5, %v406_v34 }
 0x301   : > { %908 = vtanh.f32 %v407_v36 }
 0x305   : > { %v907_v35 = vpop.eup %906 }
 0x306   : > { %417 = vrot.lane.b32.xlu2 %v907_v35, %s957_s24 }
 0x307   : > { %v909_v37 = vpop.eup %908 }
 0x308   : > { %v409_v38 = vadd.f32 1.0, %v909_v37 }
 0x30a   : > { %v410_v39 = vmul.f32 0.5, %v409_v38 }
 0x30c   : > { %v415_v43 = vmul.f32 %v413_v42, %v410_v39 }
 0x360   : > { %v418_v40 = vpop.permute.xlu2 %417 }
 0x361   : > { %v420_v41 = vmul.f32 %v418_v40, %v410_v39 }
 0x363   : > { %422 = vrot.lane.b32.xlu2 %v420_v41, %s958_s25 }
 0x3bd   : > { %v423_v44 = vpop.permute.xlu2 %422 }
 0x3be   : > { %v425_v45 = vadd.f32 %v423_v44, %v415_v43 }
 0x3c0   : > { %910 = vtanh.f32 %v425_v45  ;;  %v473_v61 = vrot.slane %v425_v45, 7 }
 0x3c6   : > { %v911_v46 = vpop.eup %910 }
 0x3c7   : > { %428 = vrot.lane.b32.xlu0 %v911_v46, %s959_s26 }
 0x439   : > { %v429_v47 = vpop.permute.xlu0 %428 }
 0x43a   : > { %v1078_v48 = vmul.f32 %v429_v47, %v410_v39 }
 0x43c   : > { %v438_v49 = vrot.slane %v1078_v48, 1 }
 0x43e   : > { %439 = vrot.lane.b32.xlu1 %v438_v49, %s960_s27 }
 0x4b0   : > { %v440_v50 = vpop.permute.xlu1 %439 }
 0x4b1   : > { %873 = vmatmul.msk.f32.vlgmr.msrb.gmra.mxu2 %vm324_vm4, %v440_v50 }
 0x534   : > { %v460_v51 = vpop.f32.mrf.mxu2 }
 0x535   : > { %v464_v52 = vrot.slane %v460_v51, 6 }
 0x537   : > { %v466_v53 = vadd.f32 %v464_v52, %v1056_v16 }
 0x539   : > { %912 = vtanh.f32 %v466_v53  ;;  %v467_v55 = vmul.f32 0.5, %v466_v53 }
 0x53b   : > { %914 = vtanh.f32 %v467_v55 }
 0x53f   : > { %v913_v54 = vpop.eup %912 }
 0x540   : > { %477 = vrot.lane.b32.xlu2 %v913_v54, %s957_s24 }
 0x541   : > { %v915_v56 = vpop.eup %914 }
 0x542   : > { %v469_v57 = vadd.f32 1.0, %v915_v56 }
 0x544   : > { %v470_v58 = vmul.f32 0.5, %v469_v57 }
 0x546   : > { %v475_v62 = vmul.f32 %v473_v61, %v470_v58 }
 0x59a   : > { %v478_v59 = vpop.permute.xlu2 %477 }
 0x59b   : > { %v480_v60 = vmul.f32 %v478_v59, %v470_v58 }
 0x59d   : > { %482 = vrot.lane.b32.xlu0 %v480_v60, %s958_s25 }
 0x60f   : > { %v483_v63 = vpop.permute.xlu0 %482 }
 0x610   : > { %v485_v0 = vadd.f32 %v483_v63, %v475_v62 }
 0x612   : > { %916 = vtanh.f32 %v485_v0  ;;  %v533_v17 = vrot.slane %v485_v0, 7 }
 0x618   : > { %v917_v1 = vpop.eup %916 }
 0x619   : > { %488 = vrot.lane.b32.xlu1 %v917_v1, %s959_s26 }
 0x68b   : > { %v489_v2 = vpop.permute.xlu1 %488 }
 0x68c   : > { %v1087_v3 = vmul.f32 %v489_v2, %v470_v58 }
 0x68e   : > { %v498_v4 = vrot.slane %v1087_v3, 2 }
 0x690   : > { %499 = vrot.lane.b32.xlu2 %v498_v4, %s960_s27 }
 0x6ea   : > { %v500_v5 = vpop.permute.xlu2 %499 }
 0x6eb   : > { %875 = vmatmul.msk.f32.vlgmr.msrb.gmra.mxu3 %vm324_vm4, %v500_v5 }
 0x76e   : > { %v520_v6 = vpop.f32.mrf.mxu3 }
 0x76f   : > { %v524_v7 = vrot.slane %v520_v6, 5 }
 0x771   : > { %v526_v8 = vadd.f32 %v524_v7, %v1056_v16 }
 0x773   : > { %918 = vtanh.f32 %v526_v8  ;;  %v527_v10 = vmul.f32 0.5, %v526_v8 }
 0x775   : > { %920 = vtanh.f32 %v527_v10 }
 0x779   : > { %v919_v9 = vpop.eup %918 }
 0x77a   : > { %537 = vrot.lane.b32.xlu0 %v919_v9, %s957_s24 }
 0x77b   : > { %v921_v11 = vpop.eup %920 }
 0x77c   : > { %v529_v12 = vadd.f32 1.0, %v921_v11 }
 0x77e   : > { %v530_v13 = vmul.f32 0.5, %v529_v12 }
 0x780   : > { %v535_v18 = vmul.f32 %v533_v17, %v530_v13 }
 0x7ec   : > { %v538_v14 = vpop.permute.xlu0 %537 }
 0x7ed   : > { %v540_v15 = vmul.f32 %v538_v14, %v530_v13 }
 0x7ef   : > { %542 = vrot.lane.b32.xlu1 %v540_v15, %s958_s25 }
 0x861   : > { %v543_v19 = vpop.permute.xlu1 %542 }
 0x862   : > { %v545_v20 = vadd.f32 %v543_v19, %v535_v18 }
 0x864   : > { %922 = vtanh.f32 %v545_v20  ;;  %v593_v36 = vrot.slane %v545_v20, 7 }
 0x86a   : > { %v923_v21 = vpop.eup %922 }
 0x86b   : > { %548 = vrot.lane.b32.xlu2 %v923_v21, %s959_s26 }
 0x8c5   : > { %v549_v22 = vpop.permute.xlu2 %548 }
 0x8c6   : > { %v1096_v23 = vmul.f32 %v549_v22, %v530_v13 }
 0x8c8   : > { %v558_v24 = vrot.slane %v1096_v23, 3 }
 0x8ca   : > { %559 = vrot.lane.b32.xlu0 %v558_v24, %s960_s27 }
 0x93c   : > { %v560_v25 = vpop.permute.xlu0 %559 }
 0x93d   : > { %877 = vmatmul.msk.f32.vlgmr.msrb.gmra.mxu1 %vm324_vm4, %v560_v25 }
 0x9ba   : > { %v580_v26 = vpop.f32.mrf.mxu1 }
 0x9bb   : > { %v584_v27 = vrot.slane %v580_v26, 4 }
 0x9bd   : > { %v586_v28 = vadd.f32 %v584_v27, %v1056_v16 }
 0x9bf   : > { %924 = vtanh.f32 %v586_v28  ;;  %v587_v30 = vmul.f32 0.5, %v586_v28 }
 0x9c1   : > { %926 = vtanh.f32 %v587_v30 }
 0x9c5   : > { %v925_v29 = vpop.eup %924 }
 0x9c6   : > { %597 = vrot.lane.b32.xlu1 %v925_v29, %s957_s24 }
 0x9c7   : > { %v927_v31 = vpop.eup %926 }
 0x9c8   : > { %v589_v32 = vadd.f32 1.0, %v927_v31 }
 0x9ca   : > { %v590_v33 = vmul.f32 0.5, %v589_v32 }
 0x9cc   : > { %v595_v37 = vmul.f32 %v593_v36, %v590_v33 }
 0xa38   : > { %v598_v34 = vpop.permute.xlu1 %597 }
 0xa39   : > { %v600_v35 = vmul.f32 %v598_v34, %v590_v33 }
 0xa3b   : > { %602 = vrot.lane.b32.xlu2 %v600_v35, %s958_s25 }
 0xa95   : > { %v603_v38 = vpop.permute.xlu2 %602 }
 0xa96   : > { %v605_v39 = vadd.f32 %v603_v38, %v595_v37 }
 0xa98   : > { %928 = vtanh.f32 %v605_v39  ;;  %v653_v56 = vrot.slane %v605_v39, 7 }
 0xa9e   : > { %v929_v40 = vpop.eup %928 }
 0xa9f   : > { %608 = vrot.lane.b32.xlu0 %v929_v40, %s959_s26 }
 0xb11   : > { %v609_v41 = vpop.permute.xlu0 %608 }
 0xb12   : > { %v1105_v42 = vmul.f32 %v609_v41, %v590_v33 }
 0xb14   : > { %v618_v43 = vrot.slane %v1105_v42, 4 }
 0xb16   : > { %619 = vrot.lane.b32.xlu1 %v618_v43, %s960_s27 }
 0xb88   : > { %v620_v44 = vpop.permute.xlu1 %619 }
 0xb89   : > { %879 = vmatmul.msk.f32.vlgmr.msrb.gmra.mxu0 %vm324_vm4, %v620_v44 }
 0xc06   : > { %v640_v45 = vpop.f32.mrf.mxu0 }
 0xc07   : > { %v644_v46 = vrot.slane %v640_v45, 3 }
 0xc09   : > { %v646_v47 = vadd.f32 %v644_v46, %v1056_v16 }
 0xc0b   : > { %930 = vtanh.f32 %v646_v47  ;;  %v647_v50 = vmul.f32 0.5, %v646_v47 }
 0xc0d   : > { %932 = vtanh.f32 %v647_v50 }
 0xc11   : > { %v931_v49 = vpop.eup %930 }
 0xc12   : > { %657 = vrot.lane.b32.xlu2 %v931_v49, %s957_s24 }
 0xc13   : > { %v933_v51 = vpop.eup %932 }
 0xc14   : > { %v649_v52 = vadd.f32 1.0, %v933_v51 }
 0xc16   : > { %v650_v53 = vmul.f32 0.5, %v649_v52 }
 0xc18   : > { %v655_v57 = vmul.f32 %v653_v56, %v650_v53 }
 0xc6c   : > { %v658_v54 = vpop.permute.xlu2 %657 }
 0xc6d   : > { %v660_v55 = vmul.f32 %v658_v54, %v650_v53 }
 0xc6f   : > { %662 = vrot.lane.b32.xlu0 %v660_v55, %s958_s25 }
 0xce1   : > { %v663_v58 = vpop.permute.xlu0 %662 }
 0xce2   : > { %v665_v59 = vadd.f32 %v663_v58, %v655_v57 }
 0xce4   : > { %934 = vtanh.f32 %v665_v59  ;;  %v713_v12 = vrot.slane %v665_v59, 7 }
 0xcea   : > { %v935_v60 = vpop.eup %934 }
 0xceb   : > { %668 = vrot.lane.b32.xlu1 %v935_v60, %s959_s26 }
 0xd5d   : > { %v669_v61 = vpop.permute.xlu1 %668 }
 0xd5e   : > { %v671_v62 = vmul.f32 %v669_v61, %v650_v53 }
 0xd60   : > { %v678_v63 = vrot.slane %v671_v62, 5 }
 0xd62   : > { %679 = vrot.lane.b32.xlu2 %v678_v63, %s960_s27 }
 0xdbc   : > { %v680_v0 = vpop.permute.xlu2 %679 }
 0xdbd   : > { %881 = vmatmul.msk.f32.vlgmr.msra.gmra.mxu2 %vm324_vm4, %v680_v0 }
 0xe40   : > { %v700_v1 = vpop.f32.mrf.mxu2 }
 0xe41   : > { %v704_v2 = vrot.slane %v700_v1, 2 }
 0xe43   : > { %v706_v4 = vadd.f32 %v704_v2, %v1056_v16 }
 0xe45   : > { %936 = vtanh.f32 %v706_v4  ;;  %v707_v6 = vmul.f32 0.5, %v706_v4 }
 0xe47   : > { %938 = vtanh.f32 %v707_v6 }
 0xe4b   : > { %v937_v5 = vpop.eup %936 }
 0xe4c   : > { %717 = vrot.lane.b32.xlu0 %v937_v5, %s957_s24 }
 0xe4d   : > { %v939_v7 = vpop.eup %938 }
 0xe4e   : > { %v709_v8 = vadd.f32 1.0, %v939_v7 }
 0xe50   : > { %v710_v9 = vmul.f32 0.5, %v709_v8 }
 0xe52   : > { %v715_v13 = vmul.f32 %v713_v12, %v710_v9 }
 0xebe   : > { %v718_v10 = vpop.permute.xlu0 %717 }
 0xebf   : > { %v720_v11 = vmul.f32 %v718_v10, %v710_v9 }
 0xec1   : > { %722 = vrot.lane.b32.xlu1 %v720_v11, %s958_s25 }
 0xf33   : > { %v723_v14 = vpop.permute.xlu1 %722 }
 0xf34   : > { %v725_v15 = vadd.f32 %v723_v14, %v715_v13 }
 0xf36   : > { %940 = vtanh.f32 %v725_v15  ;;  %v773_v33 = vrot.slane %v725_v15, 7 }
 0xf3c   : > { %v941_v17 = vpop.eup %940 }
 0xf3d   : > { %728 = vrot.lane.b32.xlu2 %v941_v17, %s959_s26 }
 0xf97   : > { %v729_v18 = vpop.permute.xlu2 %728 }
 0xf98   : > { %v731_v19 = vmul.f32 %v729_v18, %v710_v9 }
 0xf9a   : > { %v738_v20 = vrot.slane %v731_v19, 6 }
 0xf9c   : > { %739 = vrot.lane.b32.xlu0 %v738_v20, %s960_s27 }
0x100e   : > { %v740_v21 = vpop.permute.xlu0 %739 }
0x100f   : > { %883 = vmatmul.msk.f32.vlgmr.msra.gmra.mxu3 %vm324_vm4, %v740_v21 }
0x1092   : > { %v760_v22 = vpop.f32.mrf.mxu3 }
0x1093   : > { %v764_v24 = vrot.slane %v760_v22, 1 }
0x1095   : > { %v766_v25 = vadd.f32 %v764_v24, %v1056_v16 }
0x1097   : > { %942 = vtanh.f32 %v766_v25  ;;  %v767_v27 = vmul.f32 0.5, %v766_v25 }
0x1099   : > { %944 = vtanh.f32 %v767_v27 }
0x109d   : > { %v943_v26 = vpop.eup %942 }
0x109e   : > { %777 = vrot.lane.b32.xlu1 %v943_v26, %s957_s24 }
0x109f   : > { %v945_v28 = vpop.eup %944 }
0x10a0   : > { %v769_v29 = vadd.f32 1.0, %v945_v28 }
0x10a2   : > { %v770_v30 = vmul.f32 0.5, %v769_v29 }
0x10a4   : > { %v775_v34 = vmul.f32 %v773_v33, %v770_v30 }
0x10a6   : > { %433 = vrot.lane.b32.xlu1 %v1078_v48, %s960_s27 }
0x10ae   : > { %613 = vrot.lane.b32.xlu1 %v1105_v42, %s960_s27 }
0x1110   : > { %v778_v31 = vpop.permute.xlu1 %777 }
0x1111   : > { %v780_v32 = vmul.f32 %v778_v31, %v770_v30 }
0x1113   : > { %782 = vrot.lane.b32.xlu2 %v780_v32, %s958_s25 }
0x1118   : > { %v434_v16 = vpop.permute.xlu1 %433 }
0x1119   : > { %437 = vst.msk [vmem:[%s1068_s30] sm:$0x2] %vm436_vm5, %v434_v16 }
0x111b   : > { %493 = vrot.lane.b32.xlu2 %v1087_v3, %s960_s27 }
0x1120   : > { %v614_v48 = vpop.permute.xlu1 %613 }
0x1121   : > { %617 = vst.msk [vmem:[%s1068_s30] sm:$0x10] %vm616_vm6, %v614_v48 }
0x1123   : > { %673 = vrot.lane.b32.xlu2 %v671_v62, %s960_s27 }
0x116d   : > { %v783_v35 = vpop.permute.xlu2 %782 }
0x116e   : > { %v785_v36 = vadd.f32 %v783_v35, %v775_v34 }
0x1170   : > { %946 = vtanh.f32 %v785_v36 }
0x1175   : > { %v494_v37 = vpop.permute.xlu2 %493 }
0x1176   : > { %v947_v38 = vpop.eup %946  ;;  %497 = vst.msk [vmem:[%s1068_s30] sm:$0x4] %vm496_vm7, %v494_v37 }
0x1177   : > { %788 = vrot.lane.b32.xlu0 %v947_v38, %s959_s26 }
0x117d   : > { %v674_v3 = vpop.permute.xlu2 %673 }
0x117e   : > { %677 = vst.msk [vmem:[%s1068_s30] sm:$0x20] %vm676_vm8, %v674_v3 }
0x117f   : > { %553 = vrot.lane.b32.xlu0 %v1096_v23, %s960_s27 }
0x1187   : > { %733 = vrot.lane.b32.xlu0 %v731_v19, %s960_s27 }
0x11e9   : > { %v789_v39 = vpop.permute.xlu0 %788 }
0x11ea   : > { %v791_v40 = vmul.f32 %v789_v39, %v770_v30 }
0x11ec   : > { %793 = vrot.lane.b32.xlu1 %v791_v40, %s960_s27 }
0x11f1   : > { %v554_v41 = vpop.permute.xlu0 %553 }
0x11f2   : > { %557 = vst.msk [vmem:[%s1068_s30] sm:$0x8] %vm556_vm9, %v554_v41 }
0x11f9   : > { %v734_v42 = vpop.permute.xlu0 %733 }
0x11fa   : > { %737 = vst.msk [vmem:[%s1068_s30] sm:$0x40] %vm736_vm10, %v734_v42 }
0x125e   : > { %v794_v43 = vpop.permute.xlu1 %793 }
0x125f   : > { %797 = vst.msk [vmem:[%s1068_s30] sm:$0x80] %vm796_vm11, %v794_v43 }
0x1260 PF: > { %s16_s21 = sadd.s32 1, %s954_s21  }
0x1261   : > { %p13_p4 = scmp.ge.s32.totalorder %s16_s21, 4  }
0x1263   :  { %15 = sbr.rel (!%p13_p4) target bundleno = 1 (0x1), region = 77 }

</bundles_post_ra>
